<compile_context>
chip_gen: v6e
topology: v6e:2x2x1
jax: 0.10.0
libtpu: 0.0.40
codegen_flags: <defaults>
</compile_context>

<pallas_src>
import jax
import jax.numpy as jnp
from jax import lax
from jax.experimental import pallas as pl
from jax.experimental.pallas import tpu as pltpu

# ----------------------------- configuration --------------------------------
N, C_IN, C_OUT = 2, 4, 8
H = W = 16
HW = H * W
T = N * HW                       # total lane extent (batch-major flattened)
KEY_C, HEADS, VAL_C = 8, 2, 8
HK = KEY_C // HEADS
HV = VAL_C // HEADS
USE_ATTENTION = True
LRELU_SLOPE = 0.2
BN_EPS = 1e-5

assert (W & (W - 1)) == 0 and (H & (H - 1)) == 0, "bitmask trick needs pow2 H/W"
assert C_IN <= C_OUT
LOG2_W = W.bit_length() - 1

K2 = 9 * C_OUT                   # stacked-tap contraction size (8-row tap slots)

# packed small-vector slab column layout (rows: 0..7 conv1/common, 8..15 skip/bd)
VW_WCOL = max(VAL_C, KEY_C)      # width of the wr / block-diag-mask column block
VW_G1SK = VW_WCOL                # gamma for [conv1 ; skip] BN (16 rows)
VW_BE1SK = VW_WCOL + 1           # beta  for [conv1 ; skip] BN
VW_G2 = VW_WCOL + 2              # gamma bn2
VW_BE2 = VW_WCOL + 3             # beta bn2
VW_BR = VW_WCOL + 4              # reprojection bias
VW_NCOL = VW_WCOL + 5


# ----------------------------- fused Pallas kernel ---------------------------
def _resblock_kernel(x_ref, w_ref, kb_ref, vw_ref, o_ref, stack_ref):
    f32 = jnp.float32

    # ---- per-lane (h, w) position masks for the 3x3 halo (padding=1) --------
    t_idx = lax.broadcasted_iota(jnp.int32, (1, T), 1)
    col = jnp.bitwise_and(t_idx, W - 1)
    row = jnp.bitwise_and(jnp.right_shift(t_idx, LOG2_W), H - 1)
    not_top = jnp.where(row > 0, 1.0, 0.0)
    not_bot = jnp.where(row < H - 1, 1.0, 0.0)
    not_left = jnp.where(col > 0, 1.0, 0.0)
    not_right = jnp.where(col < W - 1, 1.0, 0.0)

    def tap_mask(kh, kw):
        m = None
        if kh == 0:
            m = not_top
        elif kh == 2:
            m = not_bot
        if kw == 0:
            m = not_left if m is None else m * not_left
        elif kw == 2:
            m = not_right if m is None else m * not_right
        return m

    def fill_stack(x):
        # Write the 9 rolled+masked tap slabs into the VMEM tap stack; every
        # tap gets an 8-row slot so all stores start on a sublane-tile boundary.
        cpt = x.shape[0]
        for kh in range(3):
            for kw in range(3):
                j = kh * 3 + kw
                d = (kh - 1) * W + (kw - 1)        # flattened source offset
                xs = x if d == 0 else pltpu.roll(x, (-d) % T, axis=1)
                m = tap_mask(kh, kw)
                if m is not None:                  # zero the padded halo reads
                    xs = xs * m
                stack_ref[j * C_OUT:j * C_OUT + cpt, :] = xs

    def bn_fold(z, gamma, beta):
        # training-mode BN, single-pass biased stats over (N,H,W), folded affine
        inv = 1.0 / T
        mean = jnp.sum(z, axis=1, keepdims=True) * inv
        ex2 = jnp.sum(z * z, axis=1, keepdims=True) * inv
        a = gamma * lax.rsqrt(ex2 - mean * mean + BN_EPS)
        return z * a + (beta - mean * a)

    def leaky(z):
        return jnp.where(z >= 0, z, LRELU_SLOPE * z)

    # ---- packed small operands ----------------------------------------------
    vw = vw_ref[...]                                   # (16, VW_NCOL)
    wr = vw[0:C_OUT, 0:VAL_C]                          # (8, 8) reprojection
    bd = vw[C_OUT:C_OUT + VAL_C, 0:KEY_C]              # (8, 8) head block-diag mask
    g1sk = vw[:, VW_G1SK:VW_G1SK + 1]                  # (16, 1): [g1 ; gsk]
    be1sk = vw[:, VW_BE1SK:VW_BE1SK + 1]               # (16, 1): [be1; besk]
    g2 = vw[0:C_OUT, VW_G2:VW_G2 + 1]
    be2 = vw[0:C_OUT, VW_BE2:VW_BE2 + 1]
    br = vw[0:C_OUT, VW_BR:VW_BR + 1]

    kb = kb_ref[...]                                   # (24, 9)
    wkqv = kb[:, 0:C_OUT]
    bkqv = kb[:, C_OUT:C_OUT + 1]

    x_flat = x_ref[...]                                # (C_IN, T), flattened in wrapper

    # Conv1 only fills C_IN rows of every 8-row tap slot; zero the stack once so
    # the (zero-weight) padded rows never multiply garbage/NaN VMEM contents.
    stack_ref[...] = jnp.zeros((K2, T), f32)

    # ---- stage 1 + skip: ONE stacked-tap matmul (conv biases cancel in BN) ---
    fill_stack(x_flat)
    pre1sk = jnp.dot(w_ref[0:2 * C_OUT, :], stack_ref[...],
                     preferred_element_type=f32)       # (16, T): conv1 | skip 1x1
    z1r = bn_fold(pre1sk, g1sk, be1sk)                 # fused bn1 + skip_bn
    z1 = leaky(z1r[0:C_OUT])                           # dropout_rate=0 -> Identity
    r = z1r[C_OUT:2 * C_OUT]                           # skip path, post-BN

    # ---- stage 2: conv2 -> bn2 ------------------------------------------------
    fill_stack(z1)
    z2 = bn_fold(jnp.dot(w_ref[2 * C_OUT:3 * C_OUT, :], stack_ref[...],
                         preferred_element_type=f32), g2, be2)

    # ---- efficient attention ---------------------------------------------------
    if USE_ATTENTION:
        kqv = jnp.dot(wkqv, z2, preferred_element_type=f32) + bkqv   # (24, T)
        keys = kqv[0:KEY_C]
        qrys = kqv[KEY_C:2 * KEY_C]
        vals = kqv[2 * KEY_C:2 * KEY_C + VAL_C]

        # keys softmax over spatial (dim=2): one exp, per-image segment sums
        ek = jnp.exp(keys - jnp.max(keys, axis=1, keepdims=True))
        den_k = None
        for n in range(N):
            s = jnp.sum(ek[:, n * HW:(n + 1) * HW], axis=1, keepdims=True)
            rs = pl.reciprocal(s)
            den_k = rs if den_k is None else jnp.where(t_idx >= n * HW, rs, den_k)
        keys_sm = ek * den_k

        # queries softmax over the head's key-channels (dim=1): per-head sums
        eq = jnp.exp(qrys - jnp.max(qrys, axis=0, keepdims=True))
        row_c = lax.broadcasted_iota(jnp.int32, (KEY_C, 1), 0)
        den_q = None
        for i in range(HEADS):
            s = jnp.sum(eq[i * HK:(i + 1) * HK, :], axis=0, keepdims=True)
            rs = pl.reciprocal(s)
            den_q = rs if den_q is None else jnp.where(row_c >= i * HK, rs, den_q)
        qrys_sm = eq * den_q

    # ---- per-batch attention core + epilogue (single store per element) ------
    for n in range(N):
        s0 = n * HW
        z2n = z2[:, s0:s0 + HW]
        if USE_ATTENTION:
            # full context (all heads in one matmul); off-diagonal head blocks
            # are masked so the reprojection can be folded before the q matmul.
            ctxT = lax.dot_general(
                vals[:, s0:s0 + HW], keys_sm[:, s0:s0 + HW],
                (((1,), (1,)), ((), ())), preferred_element_type=f32) * bd
            w_eff = jnp.dot(wr, ctxT, preferred_element_type=f32)       # (8, 8)
            rep = jnp.dot(w_eff, qrys_sm[:, s0:s0 + HW],
                          preferred_element_type=f32)                   # (8, HW)
            z2n = rep + br + z2n
        o_ref[:, s0:s0 + HW] = leaky(z2n + r[:, s0:s0 + HW])


# ----------------------------- JAX wrapper ------------------------------------
def _stack_conv_weight(wt, slot):
    # (O, I, 3, 3) -> (O, 9*slot): tap-major columns, each tap padded to `slot`
    o, i = wt.shape[0], wt.shape[1]
    wt = jnp.transpose(wt, (0, 2, 3, 1))                       # (O, 3, 3, I)
    wt = jnp.pad(wt, ((0, 0), (0, 0), (0, 0), (0, slot - i)))
    return wt.reshape(o, 9 * slot)


def resblock_forward(x, p):
    n, c_in, h, w = x.shape
    assert (n, c_in, h, w) == (N, C_IN, H, W)
    hw = h * w

    # ---- tiny weight repacking (static w.r.t. activations; fused by XLA) ----
    w1s = _stack_conv_weight(p['w1'], C_OUT)                   # (8, 72)
    w2s = _stack_conv_weight(p['w2'], C_OUT)                   # (8, 72)
    # skip 1x1 folded into the conv1 stacked matmul: only center-tap columns
    wsk_rows = jnp.zeros((C_OUT, K2), jnp.float32)
    wsk_rows = wsk_rows.at[:, 4 * C_OUT:4 * C_OUT + C_IN].set(p['wsk'])
    w_slab = jnp.concatenate([w1s, wsk_rows, w2s], axis=0)     # (24, 72)

    kb = jnp.concatenate([p['wk'], p['wq'], p['wv']], axis=0)  # (24, 8)
    kb = jnp.concatenate(
        [kb, jnp.concatenate([p['bk'], p['bq'], p['bv']]).reshape(-1, 1)],
        axis=1)                                                # (24, 9)

    # NOTE: conv biases b1, b2, bsk are intentionally unused — a per-channel
    # constant before a training-mode BatchNorm cancels exactly in (z - mean).
    bd_mask = (jnp.arange(VAL_C)[:, None] // HV ==
               jnp.arange(KEY_C)[None, :] // HK).astype(jnp.float32)
    vw = jnp.zeros((2 * C_OUT, VW_NCOL), jnp.float32)
    vw = vw.at[0:C_OUT, 0:VAL_C].set(p['wr'])
    vw = vw.at[C_OUT:C_OUT + VAL_C, 0:KEY_C].set(bd_mask)
    vw = vw.at[:, VW_G1SK].set(jnp.concatenate([p['g1'], p['gsk']]))
    vw = vw.at[:, VW_BE1SK].set(jnp.concatenate([p['be1'], p['besk']]))
    vw = vw.at[0:C_OUT, VW_G2].set(p['g2'])
    vw = vw.at[0:C_OUT, VW_BE2].set(p['be2'])
    vw = vw.at[0:C_OUT, VW_BR].set(p['br'])

    # batch-major flattened lane layout (C_IN, N*HW); wrapper-side plumbing
    x_flat = jnp.transpose(x.reshape(n, c_in, hw), (1, 0, 2)).reshape(c_in, n * hw)

    out = pl.pallas_call(
        _resblock_kernel,
        out_shape=jax.ShapeDtypeStruct((C_OUT, n * hw), jnp.float32),
        in_specs=[pl.BlockSpec(memory_space=pltpu.MemorySpace.VMEM)] * 4,
        out_specs=pl.BlockSpec(memory_space=pltpu.MemorySpace.VMEM),
        scratch_shapes=[pltpu.VMEM((K2, n * hw), jnp.float32)],
    )(x_flat, w_slab, kb, vw)
    # (C_OUT, N*HW) lane-dense slab -> (N, C_OUT, H, W)
    return out.reshape(C_OUT, n, hw).transpose(1, 0, 2).reshape(n, C_OUT, h, w)


# ----------------------------- pure-JAX reference -----------------------------
def _attention_ref(x4, p):
    n, c, h, w = x4.shape
    flat = x4.reshape(n, c, h * w)
    proj = lambda w_, b_: jnp.einsum('oc,ncs->nos', w_, flat) + b_[None, :, None]
    keys, qrys, vals = proj(p['wk'], p['bk']), proj(p['wq'], p['bq']), proj(p['wv'], p['bv'])
    hk, hv = KEY_C // HEADS, VAL_C // HEADS
    outs = []
    for i in range(HEADS):
        k = jax.nn.softmax(keys[:, i * hk:(i + 1) * hk, :], axis=2)
        q = jax.nn.softmax(qrys[:, i * hk:(i + 1) * hk, :], axis=1)
        v = vals[:, i * hv:(i + 1) * hv, :]
        ctx = jnp.matmul(k, jnp.swapaxes(v, 1, 2))
        outs.append(jnp.matmul(jnp.swapaxes(ctx, 1, 2), q))
    agg = jnp.concatenate(outs, axis=1)
    rep = jnp.einsum('ov,nvs->nos', p['wr'], agg) + p['br'][None, :, None]
    return (rep + flat).reshape(n, c, h, w)


def resblock_ref(x, p):
    def conv3x3(xx, wt, b):
        y = lax.conv_general_dilated(xx, wt, (1, 1), [(1, 1), (1, 1)],
                                     dimension_numbers=('NCHW', 'OIHW', 'NCHW'))
        return y + b[None, :, None, None]

    def bn(xx, g, be):
        mu = xx.mean(axis=(0, 2, 3), keepdims=True)
        var = ((xx - mu) ** 2).mean(axis=(0, 2, 3), keepdims=True)
        return (g[None, :, None, None] * (xx - mu) / jnp.sqrt(var + BN_EPS)
                + be[None, :, None, None])

    def lrelu(xx):
        return jnp.where(xx >= 0, xx, LRELU_SLOPE * xx)

    out = lrelu(bn(conv3x3(x, p['w1'], p['b1']), p['g1'], p['be1']))
    out = bn(conv3x3(out, p['w2'], p['b2']), p['g2'], p['be2'])
    if USE_ATTENTION:
        out = _attention_ref(out, p)
    res = jnp.einsum('oc,nchw->nohw', p['wsk'], x) + p['bsk'][None, :, None, None]
    res = bn(res, p['gsk'], p['besk'])
    return lrelu(out + res)


# ----------------------------- parameter init ---------------------------------
def init_params(key):
    ks = jax.random.split(key, 24)
    nrm = lambda k, s, sc=0.1: sc * jax.random.normal(k, s, jnp.float32)
    p = {}
    p['w1'] = nrm(ks[0], (C_OUT, C_IN, 3, 3));  p['b1'] = nrm(ks[1], (C_OUT,))
    p['g1'] = 1.0 + nrm(ks[2], (C_OUT,));       p['be1'] = nrm(ks[3], (C_OUT,))
    p['w2'] = nrm(ks[4], (C_OUT, C_OUT, 3, 3)); p['b2'] = nrm(ks[5], (C_OUT,))
    p['g2'] = 1.0 + nrm(ks[6], (C_OUT,));       p['be2'] = nrm(ks[7], (C_OUT,))
    p['wsk'] = nrm(ks[8], (C_OUT, C_IN));       p['bsk'] = nrm(ks[9], (C_OUT,))
    p['gsk'] = 1.0 + nrm(ks[10], (C_OUT,));     p['besk'] = nrm(ks[11], (C_OUT,))
    p['wk'] = nrm(ks[12], (KEY_C, C_OUT));      p['bk'] = nrm(ks[13], (KEY_C,))
    p['wq'] = nrm(ks[14], (KEY_C, C_OUT));      p['bq'] = nrm(ks[15], (KEY_C,))
    p['wv'] = nrm(ks[16], (VAL_C, C_OUT));      p['bv'] = nrm(ks[17], (VAL_C,))
    p['wr'] = nrm(ks[18], (C_OUT, VAL_C));      p['br'] = nrm(ks[19], (C_OUT,))
    return p


# ----------------------------- main -------------------------------------------
if __name__ == "__main__":
    key = jax.random.PRNGKey(0)
    kx, kp = jax.random.split(key)
    x = jax.random.normal(kx, (N, C_IN, H, W), jnp.float32)
    params = init_params(kp)

    out = jax.jit(resblock_forward)(x, params)
    jax.block_until_ready(out)
    assert out.shape == (N, C_OUT, H, W)

    ref = resblock_ref(x, params)
    err = float(jnp.max(jnp.abs(out - ref)))
    if not err < 1e-3:
        raise AssertionError(f"Pallas ResBlock mismatch vs JAX reference: max|err|={err}")
    print("KERNEL_OK")
</pallas_src>

<mosaic_0001>
module attributes {stable_mosaic.version = 11 : i64} {
  func.func @_resblock_kernel(%arg0: memref<4x512xf32, #tpu.memory_space<vmem>>, %arg1: memref<24x72xf32, #tpu.memory_space<vmem>>, %arg2: memref<24x9xf32, #tpu.memory_space<vmem>>, %arg3: memref<16x13xf32, #tpu.memory_space<vmem>>, %arg4: memref<8x512xf32, #tpu.memory_space<vmem>>, %arg5: memref<72x512xf32, #tpu.memory_space<vmem>>) attributes {dimension_semantics = [], scalar_prefetch = 0 : i64, scratch_operands = 1 : i64, tpu.core_type = #tpu.core_type<tc>} {
    %0 = tpu.iota {dimensions = array<i32: 1>} : vector<1x512xi32>
    %c15_i32 = arith.constant 15 : i32
    %1 = vector.broadcast %c15_i32 : i32 to vector<1x512xi32>
    %2 = arith.andi %0, %1 : vector<1x512xi32>
    %c4_i32 = arith.constant 4 : i32
    %3 = vector.broadcast %c4_i32 : i32 to vector<1x512xi32>
    %4 = arith.shrsi %0, %3 : vector<1x512xi32>
    %c15_i32_0 = arith.constant 15 : i32
    %5 = vector.broadcast %c15_i32_0 : i32 to vector<1x512xi32>
    %6 = arith.andi %4, %5 : vector<1x512xi32>
    %c0_i32 = arith.constant 0 : i32
    %7 = vector.broadcast %c0_i32 : i32 to vector<1x512xi32>
    %8 = arith.cmpi sgt, %6, %7 : vector<1x512xi32>
    %cst = arith.constant 1.000000e+00 : f32
    %cst_1 = arith.constant 0.000000e+00 : f32
    %9 = vector.broadcast %cst : f32 to vector<1x512xf32>
    %10 = vector.broadcast %cst_1 : f32 to vector<1x512xf32>
    %11 = arith.select %8, %9, %10 : vector<1x512xi1>, vector<1x512xf32>
    %c15_i32_2 = arith.constant 15 : i32
    %12 = vector.broadcast %c15_i32_2 : i32 to vector<1x512xi32>
    %13 = arith.cmpi slt, %6, %12 : vector<1x512xi32>
    %cst_3 = arith.constant 1.000000e+00 : f32
    %cst_4 = arith.constant 0.000000e+00 : f32
    %14 = vector.broadcast %cst_3 : f32 to vector<1x512xf32>
    %15 = vector.broadcast %cst_4 : f32 to vector<1x512xf32>
    %16 = arith.select %13, %14, %15 : vector<1x512xi1>, vector<1x512xf32>
    %c0_i32_5 = arith.constant 0 : i32
    %17 = vector.broadcast %c0_i32_5 : i32 to vector<1x512xi32>
    %18 = arith.cmpi sgt, %2, %17 : vector<1x512xi32>
    %cst_6 = arith.constant 1.000000e+00 : f32
    %cst_7 = arith.constant 0.000000e+00 : f32
    %19 = vector.broadcast %cst_6 : f32 to vector<1x512xf32>
    %20 = vector.broadcast %cst_7 : f32 to vector<1x512xf32>
    %21 = arith.select %18, %19, %20 : vector<1x512xi1>, vector<1x512xf32>
    %c15_i32_8 = arith.constant 15 : i32
    %22 = vector.broadcast %c15_i32_8 : i32 to vector<1x512xi32>
    %23 = arith.cmpi slt, %2, %22 : vector<1x512xi32>
    %cst_9 = arith.constant 1.000000e+00 : f32
    %cst_10 = arith.constant 0.000000e+00 : f32
    %24 = vector.broadcast %cst_9 : f32 to vector<1x512xf32>
    %25 = vector.broadcast %cst_10 : f32 to vector<1x512xf32>
    %26 = arith.select %23, %24, %25 : vector<1x512xi1>, vector<1x512xf32>
    %c0 = arith.constant 0 : index
    %c0_11 = arith.constant 0 : index
    %27 = vector.load %arg3[%c0, %c0_11] : memref<16x13xf32, #tpu.memory_space<vmem>>, vector<16x13xf32>
    %28 = vector.extract_strided_slice %27 {offsets = [0, 0], sizes = [8, 8], strides = [1, 1]} : vector<16x13xf32> to vector<8x8xf32>
    %29 = vector.extract_strided_slice %27 {offsets = [8, 0], sizes = [8, 8], strides = [1, 1]} : vector<16x13xf32> to vector<8x8xf32>
    %30 = vector.extract_strided_slice %27 {offsets = [0, 8], sizes = [16, 1], strides = [1, 1]} : vector<16x13xf32> to vector<16x1xf32>
    %31 = vector.extract_strided_slice %27 {offsets = [0, 9], sizes = [16, 1], strides = [1, 1]} : vector<16x13xf32> to vector<16x1xf32>
    %32 = vector.extract_strided_slice %27 {offsets = [0, 10], sizes = [8, 1], strides = [1, 1]} : vector<16x13xf32> to vector<8x1xf32>
    %33 = vector.extract_strided_slice %27 {offsets = [0, 11], sizes = [8, 1], strides = [1, 1]} : vector<16x13xf32> to vector<8x1xf32>
    %34 = vector.extract_strided_slice %27 {offsets = [0, 12], sizes = [8, 1], strides = [1, 1]} : vector<16x13xf32> to vector<8x1xf32>
    %c0_12 = arith.constant 0 : index
    %c0_13 = arith.constant 0 : index
    %35 = vector.load %arg2[%c0_12, %c0_13] : memref<24x9xf32, #tpu.memory_space<vmem>>, vector<24x9xf32>
    %36 = vector.extract_strided_slice %35 {offsets = [0, 0], sizes = [24, 8], strides = [1, 1]} : vector<24x9xf32> to vector<24x8xf32>
    %37 = vector.extract_strided_slice %35 {offsets = [0, 8], sizes = [24, 1], strides = [1, 1]} : vector<24x9xf32> to vector<24x1xf32>
    %c0_14 = arith.constant 0 : index
    %c0_15 = arith.constant 0 : index
    %38 = vector.load %arg0[%c0_14, %c0_15] : memref<4x512xf32, #tpu.memory_space<vmem>>, vector<4x512xf32>
    %cst_16 = arith.constant 0.000000e+00 : f32
    %39 = vector.broadcast %cst_16 : f32 to vector<72x512xf32>
    %c0_17 = arith.constant 0 : index
    %c0_18 = arith.constant 0 : index
    %40 = vector.load %arg5[%c0_17, %c0_18] : memref<72x512xf32, #tpu.memory_space<vmem>>, vector<72x512xf32>
    tpu.vector_store %arg5[%c0_17, %c0_18], %39 {strides = array<i32>} : memref<72x512xf32, #tpu.memory_space<vmem>>, vector<72x512xf32>,
    %c17_i32 = arith.constant 17 : i32
    %41 = tpu.dynamic_rotate %38 by %c17_i32 dim 1 : vector<4x512xf32>, i32 -> vector<4x512xf32>
    %42 = arith.mulf %11, %21 : vector<1x512xf32>
    %43 = vector.broadcast %42 : vector<1x512xf32> to vector<4x512xf32>
    %44 = arith.mulf %41, %43 : vector<4x512xf32>
    %c0_19 = arith.constant 0 : index
    %c0_20 = arith.constant 0 : index
    %45 = vector.load %arg5[%c0_19, %c0_20] : memref<72x512xf32, #tpu.memory_space<vmem>>, vector<4x512xf32>
    tpu.vector_store %arg5[%c0_19, %c0_20], %44 {strides = array<i32>} : memref<72x512xf32, #tpu.memory_space<vmem>>, vector<4x512xf32>,
    %c16_i32 = arith.constant 16 : i32
    %46 = tpu.dynamic_rotate %38 by %c16_i32 dim 1 : vector<4x512xf32>, i32 -> vector<4x512xf32>
    %47 = vector.broadcast %11 : vector<1x512xf32> to vector<4x512xf32>
    %48 = arith.mulf %46, %47 : vector<4x512xf32>
    %c8 = arith.constant 8 : index
    %c0_21 = arith.constant 0 : index
    %49 = vector.load %arg5[%c8, %c0_21] : memref<72x512xf32, #tpu.memory_space<vmem>>, vector<4x512xf32>
    tpu.vector_store %arg5[%c8, %c0_21], %48 {strides = array<i32>} : memref<72x512xf32, #tpu.memory_space<vmem>>, vector<4x512xf32>,
    %c15_i32_22 = arith.constant 15 : i32
    %50 = tpu.dynamic_rotate %38 by %c15_i32_22 dim 1 : vector<4x512xf32>, i32 -> vector<4x512xf32>
    %51 = arith.mulf %11, %26 : vector<1x512xf32>
    %52 = vector.broadcast %51 : vector<1x512xf32> to vector<4x512xf32>
    %53 = arith.mulf %50, %52 : vector<4x512xf32>
    %c16 = arith.constant 16 : index
    %c0_23 = arith.constant 0 : index
    %54 = vector.load %arg5[%c16, %c0_23] : memref<72x512xf32, #tpu.memory_space<vmem>>, vector<4x512xf32>
    tpu.vector_store %arg5[%c16, %c0_23], %53 {strides = array<i32>} : memref<72x512xf32, #tpu.memory_space<vmem>>, vector<4x512xf32>,
    %c1_i32 = arith.constant 1 : i32
    %55 = tpu.dynamic_rotate %38 by %c1_i32 dim 1 : vector<4x512xf32>, i32 -> vector<4x512xf32>
    %56 = vector.broadcast %21 : vector<1x512xf32> to vector<4x512xf32>
    %57 = arith.mulf %55, %56 : vector<4x512xf32>
    %c24 = arith.constant 24 : index
    %c0_24 = arith.constant 0 : index
    %58 = vector.load %arg5[%c24, %c0_24] : memref<72x512xf32, #tpu.memory_space<vmem>>, vector<4x512xf32>
    tpu.vector_store %arg5[%c24, %c0_24], %57 {strides = array<i32>} : memref<72x512xf32, #tpu.memory_space<vmem>>, vector<4x512xf32>,
    %c32 = arith.constant 32 : index
    %c0_25 = arith.constant 0 : index
    %59 = vector.load %arg5[%c32, %c0_25] : memref<72x512xf32, #tpu.memory_space<vmem>>, vector<4x512xf32>
    tpu.vector_store %arg5[%c32, %c0_25], %38 {strides = array<i32>} : memref<72x512xf32, #tpu.memory_space<vmem>>, vector<4x512xf32>,
    %c511_i32 = arith.constant 511 : i32
    %60 = tpu.dynamic_rotate %38 by %c511_i32 dim 1 : vector<4x512xf32>, i32 -> vector<4x512xf32>
    %61 = vector.broadcast %26 : vector<1x512xf32> to vector<4x512xf32>
    %62 = arith.mulf %60, %61 : vector<4x512xf32>
    %c40 = arith.constant 40 : index
    %c0_26 = arith.constant 0 : index
    %63 = vector.load %arg5[%c40, %c0_26] : memref<72x512xf32, #tpu.memory_space<vmem>>, vector<4x512xf32>
    tpu.vector_store %arg5[%c40, %c0_26], %62 {strides = array<i32>} : memref<72x512xf32, #tpu.memory_space<vmem>>, vector<4x512xf32>,
    %c497_i32 = arith.constant 497 : i32
    %64 = tpu.dynamic_rotate %38 by %c497_i32 dim 1 : vector<4x512xf32>, i32 -> vector<4x512xf32>
    %65 = arith.mulf %16, %21 : vector<1x512xf32>
    %66 = vector.broadcast %65 : vector<1x512xf32> to vector<4x512xf32>
    %67 = arith.mulf %64, %66 : vector<4x512xf32>
    %c48 = arith.constant 48 : index
    %c0_27 = arith.constant 0 : index
    %68 = vector.load %arg5[%c48, %c0_27] : memref<72x512xf32, #tpu.memory_space<vmem>>, vector<4x512xf32>
    tpu.vector_store %arg5[%c48, %c0_27], %67 {strides = array<i32>} : memref<72x512xf32, #tpu.memory_space<vmem>>, vector<4x512xf32>,
    %c496_i32 = arith.constant 496 : i32
    %69 = tpu.dynamic_rotate %38 by %c496_i32 dim 1 : vector<4x512xf32>, i32 -> vector<4x512xf32>
    %70 = vector.broadcast %16 : vector<1x512xf32> to vector<4x512xf32>
    %71 = arith.mulf %69, %70 : vector<4x512xf32>
    %c56 = arith.constant 56 : index
    %c0_28 = arith.constant 0 : index
    %72 = vector.load %arg5[%c56, %c0_28] : memref<72x512xf32, #tpu.memory_space<vmem>>, vector<4x512xf32>
    tpu.vector_store %arg5[%c56, %c0_28], %71 {strides = array<i32>} : memref<72x512xf32, #tpu.memory_space<vmem>>, vector<4x512xf32>,
    %c495_i32 = arith.constant 495 : i32
    %73 = tpu.dynamic_rotate %38 by %c495_i32 dim 1 : vector<4x512xf32>, i32 -> vector<4x512xf32>
    %74 = arith.mulf %16, %26 : vector<1x512xf32>
    %75 = vector.broadcast %74 : vector<1x512xf32> to vector<4x512xf32>
    %76 = arith.mulf %73, %75 : vector<4x512xf32>
    %c64 = arith.constant 64 : index
    %c0_29 = arith.constant 0 : index
    %77 = vector.load %arg5[%c64, %c0_29] : memref<72x512xf32, #tpu.memory_space<vmem>>, vector<4x512xf32>
    tpu.vector_store %arg5[%c64, %c0_29], %76 {strides = array<i32>} : memref<72x512xf32, #tpu.memory_space<vmem>>, vector<4x512xf32>,
    %c0_30 = arith.constant 0 : index
    %c0_31 = arith.constant 0 : index
    %78 = vector.load %arg1[%c0_30, %c0_31] : memref<24x72xf32, #tpu.memory_space<vmem>>, vector<16x72xf32>
    %c0_32 = arith.constant 0 : index
    %c0_33 = arith.constant 0 : index
    %79 = vector.load %arg5[%c0_32, %c0_33] : memref<72x512xf32, #tpu.memory_space<vmem>>, vector<72x512xf32>
    %cst_34 = arith.constant dense<0.000000e+00> : vector<16x512xf32>
    %80 = tpu.matmul %78, %79, %cst_34 {dimension_numbers = #tpu.dot_dimension_numbers<[1], [0], [0], [1], [0, 0, 1, 1], [], []>} : vector<16x72xf32>, vector<72x512xf32>, vector<16x512xf32> -> vector<16x512xf32>
    %cst_35 = arith.constant dense<0.000000e+00> : vector<16xf32>
    %81 = vector.multi_reduction <add>, %80, %cst_35 [1] : vector<16x512xf32> to vector<16xf32>
    %82 = vector.shape_cast %81 : vector<16xf32> to vector<16x1xf32>
    %cst_36 = arith.constant 0.001953125 : f32
    %83 = vector.broadcast %cst_36 : f32 to vector<16x1xf32>
    %84 = arith.mulf %82, %83 : vector<16x1xf32>
    %85 = arith.mulf %80, %80 : vector<16x512xf32>
    %cst_37 = arith.constant dense<0.000000e+00> : vector<16xf32>
    %86 = vector.multi_reduction <add>, %85, %cst_37 [1] : vector<16x512xf32> to vector<16xf32>
    %87 = vector.shape_cast %86 : vector<16xf32> to vector<16x1xf32>
    %cst_38 = arith.constant 0.001953125 : f32
    %88 = vector.broadcast %cst_38 : f32 to vector<16x1xf32>
    %89 = arith.mulf %87, %88 : vector<16x1xf32>
    %90 = arith.mulf %84, %84 : vector<16x1xf32>
    %91 = arith.subf %89, %90 : vector<16x1xf32>
    %cst_39 = arith.constant 9.99999974E-6 : f32
    %92 = vector.broadcast %cst_39 : f32 to vector<16x1xf32>
    %93 = arith.addf %91, %92 : vector<16x1xf32>
    %94 = math.rsqrt %93 : vector<16x1xf32>
    %95 = arith.mulf %30, %94 : vector<16x1xf32>
    %96 = vector.broadcast %95 : vector<16x1xf32> to vector<16x512xf32>
    %97 = arith.mulf %80, %96 : vector<16x512xf32>
    %98 = arith.mulf %84, %95 : vector<16x1xf32>
    %99 = arith.subf %31, %98 : vector<16x1xf32>
    %100 = vector.broadcast %99 : vector<16x1xf32> to vector<16x512xf32>
    %101 = arith.addf %97, %100 : vector<16x512xf32>
    %102 = vector.extract_strided_slice %101 {offsets = [0, 0], sizes = [8, 512], strides = [1, 1]} : vector<16x512xf32> to vector<8x512xf32>
    %cst_40 = arith.constant 0.000000e+00 : f32
    %103 = vector.broadcast %cst_40 : f32 to vector<8x512xf32>
    %104 = arith.cmpf oge, %102, %103 : vector<8x512xf32>
    %cst_41 = arith.constant 2.000000e-01 : f32
    %105 = vector.broadcast %cst_41 : f32 to vector<8x512xf32>
    %106 = arith.mulf %105, %102 : vector<8x512xf32>
    %107 = arith.select %104, %102, %106 : vector<8x512xi1>, vector<8x512xf32>
    %108 = vector.extract_strided_slice %101 {offsets = [8, 0], sizes = [8, 512], strides = [1, 1]} : vector<16x512xf32> to vector<8x512xf32>
    %c17_i32_42 = arith.constant 17 : i32
    %109 = tpu.dynamic_rotate %107 by %c17_i32_42 dim 1 : vector<8x512xf32>, i32 -> vector<8x512xf32>
    %110 = arith.mulf %11, %21 : vector<1x512xf32>
    %111 = vector.broadcast %110 : vector<1x512xf32> to vector<8x512xf32>
    %112 = arith.mulf %109, %111 : vector<8x512xf32>
    %c0_43 = arith.constant 0 : index
    %c0_44 = arith.constant 0 : index
    %113 = vector.load %arg5[%c0_43, %c0_44] : memref<72x512xf32, #tpu.memory_space<vmem>>, vector<8x512xf32>
    tpu.vector_store %arg5[%c0_43, %c0_44], %112 {strides = array<i32>} : memref<72x512xf32, #tpu.memory_space<vmem>>, vector<8x512xf32>,
    %c16_i32_45 = arith.constant 16 : i32
    %114 = tpu.dynamic_rotate %107 by %c16_i32_45 dim 1 : vector<8x512xf32>, i32 -> vector<8x512xf32>
    %115 = vector.broadcast %11 : vector<1x512xf32> to vector<8x512xf32>
    %116 = arith.mulf %114, %115 : vector<8x512xf32>
    %c8_46 = arith.constant 8 : index
    %c0_47 = arith.constant 0 : index
    %117 = vector.load %arg5[%c8_46, %c0_47] : memref<72x512xf32, #tpu.memory_space<vmem>>, vector<8x512xf32>
    tpu.vector_store %arg5[%c8_46, %c0_47], %116 {strides = array<i32>} : memref<72x512xf32, #tpu.memory_space<vmem>>, vector<8x512xf32>,
    %c15_i32_48 = arith.constant 15 : i32
    %118 = tpu.dynamic_rotate %107 by %c15_i32_48 dim 1 : vector<8x512xf32>, i32 -> vector<8x512xf32>
    %119 = arith.mulf %11, %26 : vector<1x512xf32>
    %120 = vector.broadcast %119 : vector<1x512xf32> to vector<8x512xf32>
    %121 = arith.mulf %118, %120 : vector<8x512xf32>
    %c16_49 = arith.constant 16 : index
    %c0_50 = arith.constant 0 : index
    %122 = vector.load %arg5[%c16_49, %c0_50] : memref<72x512xf32, #tpu.memory_space<vmem>>, vector<8x512xf32>
    tpu.vector_store %arg5[%c16_49, %c0_50], %121 {strides = array<i32>} : memref<72x512xf32, #tpu.memory_space<vmem>>, vector<8x512xf32>,
    %c1_i32_51 = arith.constant 1 : i32
    %123 = tpu.dynamic_rotate %107 by %c1_i32_51 dim 1 : vector<8x512xf32>, i32 -> vector<8x512xf32>
    %124 = vector.broadcast %21 : vector<1x512xf32> to vector<8x512xf32>
    %125 = arith.mulf %123, %124 : vector<8x512xf32>
    %c24_52 = arith.constant 24 : index
    %c0_53 = arith.constant 0 : index
    %126 = vector.load %arg5[%c24_52, %c0_53] : memref<72x512xf32, #tpu.memory_space<vmem>>, vector<8x512xf32>
    tpu.vector_store %arg5[%c24_52, %c0_53], %125 {strides = array<i32>} : memref<72x512xf32, #tpu.memory_space<vmem>>, vector<8x512xf32>,
    %c32_54 = arith.constant 32 : index
    %c0_55 = arith.constant 0 : index
    %127 = vector.load %arg5[%c32_54, %c0_55] : memref<72x512xf32, #tpu.memory_space<vmem>>, vector<8x512xf32>
    tpu.vector_store %arg5[%c32_54, %c0_55], %107 {strides = array<i32>} : memref<72x512xf32, #tpu.memory_space<vmem>>, vector<8x512xf32>,
    %c511_i32_56 = arith.constant 511 : i32
    %128 = tpu.dynamic_rotate %107 by %c511_i32_56 dim 1 : vector<8x512xf32>, i32 -> vector<8x512xf32>
    %129 = vector.broadcast %26 : vector<1x512xf32> to vector<8x512xf32>
    %130 = arith.mulf %128, %129 : vector<8x512xf32>
    %c40_57 = arith.constant 40 : index
    %c0_58 = arith.constant 0 : index
    %131 = vector.load %arg5[%c40_57, %c0_58] : memref<72x512xf32, #tpu.memory_space<vmem>>, vector<8x512xf32>
    tpu.vector_store %arg5[%c40_57, %c0_58], %130 {strides = array<i32>} : memref<72x512xf32, #tpu.memory_space<vmem>>, vector<8x512xf32>,
    %c497_i32_59 = arith.constant 497 : i32
    %132 = tpu.dynamic_rotate %107 by %c497_i32_59 dim 1 : vector<8x512xf32>, i32 -> vector<8x512xf32>
    %133 = arith.mulf %16, %21 : vector<1x512xf32>
    %134 = vector.broadcast %133 : vector<1x512xf32> to vector<8x512xf32>
    %135 = arith.mulf %132, %134 : vector<8x512xf32>
    %c48_60 = arith.constant 48 : index
    %c0_61 = arith.constant 0 : index
    %136 = vector.load %arg5[%c48_60, %c0_61] : memref<72x512xf32, #tpu.memory_space<vmem>>, vector<8x512xf32>
    tpu.vector_store %arg5[%c48_60, %c0_61], %135 {strides = array<i32>} : memref<72x512xf32, #tpu.memory_space<vmem>>, vector<8x512xf32>,
    %c496_i32_62 = arith.constant 496 : i32
    %137 = tpu.dynamic_rotate %107 by %c496_i32_62 dim 1 : vector<8x512xf32>, i32 -> vector<8x512xf32>
    %138 = vector.broadcast %16 : vector<1x512xf32> to vector<8x512xf32>
    %139 = arith.mulf %137, %138 : vector<8x512xf32>
    %c56_63 = arith.constant 56 : index
    %c0_64 = arith.constant 0 : index
    %140 = vector.load %arg5[%c56_63, %c0_64] : memref<72x512xf32, #tpu.memory_space<vmem>>, vector<8x512xf32>
    tpu.vector_store %arg5[%c56_63, %c0_64], %139 {strides = array<i32>} : memref<72x512xf32, #tpu.memory_space<vmem>>, vector<8x512xf32>,
    %c495_i32_65 = arith.constant 495 : i32
    %141 = tpu.dynamic_rotate %107 by %c495_i32_65 dim 1 : vector<8x512xf32>, i32 -> vector<8x512xf32>
    %142 = arith.mulf %16, %26 : vector<1x512xf32>
    %143 = vector.broadcast %142 : vector<1x512xf32> to vector<8x512xf32>
    %144 = arith.mulf %141, %143 : vector<8x512xf32>
    %c64_66 = arith.constant 64 : index
    %c0_67 = arith.constant 0 : index
    %145 = vector.load %arg5[%c64_66, %c0_67] : memref<72x512xf32, #tpu.memory_space<vmem>>, vector<8x512xf32>
    tpu.vector_store %arg5[%c64_66, %c0_67], %144 {strides = array<i32>} : memref<72x512xf32, #tpu.memory_space<vmem>>, vector<8x512xf32>,
    %c16_68 = arith.constant 16 : index
    %c0_69 = arith.constant 0 : index
    %146 = vector.load %arg1[%c16_68, %c0_69] : memref<24x72xf32, #tpu.memory_space<vmem>>, vector<8x72xf32>
    %c0_70 = arith.constant 0 : index
    %c0_71 = arith.constant 0 : index
    %147 = vector.load %arg5[%c0_70, %c0_71] : memref<72x512xf32, #tpu.memory_space<vmem>>, vector<72x512xf32>
    %cst_72 = arith.constant dense<0.000000e+00> : vector<8x512xf32>
    %148 = tpu.matmul %146, %147, %cst_72 {dimension_numbers = #tpu.dot_dimension_numbers<[1], [0], [0], [1], [0, 0, 1, 1], [], []>} : vector<8x72xf32>, vector<72x512xf32>, vector<8x512xf32> -> vector<8x512xf32>
    %cst_73 = arith.constant dense<0.000000e+00> : vector<8xf32>
    %149 = vector.multi_reduction <add>, %148, %cst_73 [1] : vector<8x512xf32> to vector<8xf32>
    %150 = vector.shape_cast %149 : vector<8xf32> to vector<8x1xf32>
    %cst_74 = arith.constant 0.001953125 : f32
    %151 = vector.broadcast %cst_74 : f32 to vector<8x1xf32>
    %152 = arith.mulf %150, %151 : vector<8x1xf32>
    %153 = arith.mulf %148, %148 : vector<8x512xf32>
    %cst_75 = arith.constant dense<0.000000e+00> : vector<8xf32>
    %154 = vector.multi_reduction <add>, %153, %cst_75 [1] : vector<8x512xf32> to vector<8xf32>
    %155 = vector.shape_cast %154 : vector<8xf32> to vector<8x1xf32>
    %cst_76 = arith.constant 0.001953125 : f32
    %156 = vector.broadcast %cst_76 : f32 to vector<8x1xf32>
    %157 = arith.mulf %155, %156 : vector<8x1xf32>
    %158 = arith.mulf %152, %152 : vector<8x1xf32>
    %159 = arith.subf %157, %158 : vector<8x1xf32>
    %cst_77 = arith.constant 9.99999974E-6 : f32
    %160 = vector.broadcast %cst_77 : f32 to vector<8x1xf32>
    %161 = arith.addf %159, %160 : vector<8x1xf32>
    %162 = math.rsqrt %161 : vector<8x1xf32>
    %163 = arith.mulf %32, %162 : vector<8x1xf32>
    %164 = vector.broadcast %163 : vector<8x1xf32> to vector<8x512xf32>
    %165 = arith.mulf %148, %164 : vector<8x512xf32>
    %166 = arith.mulf %152, %163 : vector<8x1xf32>
    %167 = arith.subf %33, %166 : vector<8x1xf32>
    %168 = vector.broadcast %167 : vector<8x1xf32> to vector<8x512xf32>
    %169 = arith.addf %165, %168 : vector<8x512xf32>
    %cst_78 = arith.constant dense<0.000000e+00> : vector<24x512xf32>
    %170 = tpu.matmul %36, %169, %cst_78 {dimension_numbers = #tpu.dot_dimension_numbers<[1], [0], [0], [1], [0, 0, 1, 1], [], []>} : vector<24x8xf32>, vector<8x512xf32>, vector<24x512xf32> -> vector<24x512xf32>
    %171 = vector.broadcast %37 : vector<24x1xf32> to vector<24x512xf32>
    %172 = arith.addf %170, %171 : vector<24x512xf32>
    %173 = vector.extract_strided_slice %172 {offsets = [0, 0], sizes = [8, 512], strides = [1, 1]} : vector<24x512xf32> to vector<8x512xf32>
    %174 = vector.extract_strided_slice %172 {offsets = [8, 0], sizes = [8, 512], strides = [1, 1]} : vector<24x512xf32> to vector<8x512xf32>
    %175 = vector.extract_strided_slice %172 {offsets = [16, 0], sizes = [8, 512], strides = [1, 1]} : vector<24x512xf32> to vector<8x512xf32>
    %cst_79 = arith.constant dense<0xFF800000> : vector<8xf32>
    %176 = vector.multi_reduction <maximumf>, %173, %cst_79 [1] : vector<8x512xf32> to vector<8xf32>
    %177 = vector.shape_cast %176 : vector<8xf32> to vector<8x1xf32>
    %178 = vector.broadcast %177 : vector<8x1xf32> to vector<8x512xf32>
    %179 = arith.subf %173, %178 : vector<8x512xf32>
    %180 = math.exp %179 : vector<8x512xf32>
    %181 = vector.extract_strided_slice %180 {offsets = [0, 0], sizes = [8, 256], strides = [1, 1]} : vector<8x512xf32> to vector<8x256xf32>
    %cst_80 = arith.constant dense<0.000000e+00> : vector<8xf32>
    %182 = vector.multi_reduction <add>, %181, %cst_80 [1] : vector<8x256xf32> to vector<8xf32>
    %183 = vector.shape_cast %182 : vector<8xf32> to vector<8x1xf32>
    %184 = tpu.reciprocal %183 : vector<8x1xf32> -> vector<8x1xf32>
    %185 = vector.extract_strided_slice %180 {offsets = [0, 256], sizes = [8, 256], strides = [1, 1]} : vector<8x512xf32> to vector<8x256xf32>
    %cst_81 = arith.constant dense<0.000000e+00> : vector<8xf32>
    %186 = vector.multi_reduction <add>, %185, %cst_81 [1] : vector<8x256xf32> to vector<8xf32>
    %187 = vector.shape_cast %186 : vector<8xf32> to vector<8x1xf32>
    %188 = tpu.reciprocal %187 : vector<8x1xf32> -> vector<8x1xf32>
    %c256_i32 = arith.constant 256 : i32
    %189 = vector.broadcast %c256_i32 : i32 to vector<1x512xi32>
    %190 = arith.cmpi sge, %0, %189 : vector<1x512xi32>
    %191 = vector.shape_cast %190 : vector<1x512xi1> to vector<1x512xi1>
    %192 = vector.broadcast %191 : vector<1x512xi1> to vector<8x512xi1>
    %193 = vector.shape_cast %188 : vector<8x1xf32> to vector<8x1xf32>
    %194 = vector.broadcast %193 : vector<8x1xf32> to vector<8x512xf32>
    %195 = vector.shape_cast %184 : vector<8x1xf32> to vector<8x1xf32>
    %196 = vector.broadcast %195 : vector<8x1xf32> to vector<8x512xf32>
    %197 = arith.select %192, %194, %196 : vector<8x512xi1>, vector<8x512xf32>
    %198 = arith.mulf %180, %197 : vector<8x512xf32>
    %cst_82 = arith.constant dense<0xFF800000> : vector<512xf32>
    %199 = vector.multi_reduction <maximumf>, %174, %cst_82 [0] : vector<8x512xf32> to vector<512xf32>
    %200 = vector.shape_cast %199 : vector<512xf32> to vector<1x512xf32>
    %201 = vector.broadcast %200 : vector<1x512xf32> to vector<8x512xf32>
    %202 = arith.subf %174, %201 : vector<8x512xf32>
    %203 = math.exp %202 : vector<8x512xf32>
    %204 = tpu.iota {dimensions = array<i32: 0>} : vector<8x1xi32>
    %205 = vector.extract_strided_slice %203 {offsets = [0, 0], sizes = [4, 512], strides = [1, 1]} : vector<8x512xf32> to vector<4x512xf32>
    %cst_83 = arith.constant dense<0.000000e+00> : vector<512xf32>
    %206 = vector.multi_reduction <add>, %205, %cst_83 [0] : vector<4x512xf32> to vector<512xf32>
    %207 = vector.shape_cast %206 : vector<512xf32> to vector<1x512xf32>
    %208 = tpu.reciprocal %207 : vector<1x512xf32> -> vector<1x512xf32>
    %209 = vector.extract_strided_slice %203 {offsets = [4, 0], sizes = [4, 512], strides = [1, 1]} : vector<8x512xf32> to vector<4x512xf32>
    %cst_84 = arith.constant dense<0.000000e+00> : vector<512xf32>
    %210 = vector.multi_reduction <add>, %209, %cst_84 [0] : vector<4x512xf32> to vector<512xf32>
    %211 = vector.shape_cast %210 : vector<512xf32> to vector<1x512xf32>
    %212 = tpu.reciprocal %211 : vector<1x512xf32> -> vector<1x512xf32>
    %c4_i32_85 = arith.constant 4 : i32
    %213 = vector.broadcast %c4_i32_85 : i32 to vector<8x1xi32>
    %214 = arith.cmpi sge, %204, %213 : vector<8x1xi32>
    %215 = vector.shape_cast %214 : vector<8x1xi1> to vector<8x1xi1>
    %216 = vector.broadcast %215 : vector<8x1xi1> to vector<8x512xi1>
    %217 = vector.shape_cast %212 : vector<1x512xf32> to vector<1x512xf32>
    %218 = vector.broadcast %217 : vector<1x512xf32> to vector<8x512xf32>
    %219 = vector.shape_cast %208 : vector<1x512xf32> to vector<1x512xf32>
    %220 = vector.broadcast %219 : vector<1x512xf32> to vector<8x512xf32>
    %221 = arith.select %216, %218, %220 : vector<8x512xi1>, vector<8x512xf32>
    %222 = arith.mulf %203, %221 : vector<8x512xf32>
    %223 = vector.extract_strided_slice %169 {offsets = [0, 0], sizes = [8, 256], strides = [1, 1]} : vector<8x512xf32> to vector<8x256xf32>
    %224 = vector.extract_strided_slice %175 {offsets = [0, 0], sizes = [8, 256], strides = [1, 1]} : vector<8x512xf32> to vector<8x256xf32>
    %225 = vector.extract_strided_slice %198 {offsets = [0, 0], sizes = [8, 256], strides = [1, 1]} : vector<8x512xf32> to vector<8x256xf32>
    %cst_86 = arith.constant dense<0.000000e+00> : vector<8x8xf32>
    %226 = tpu.matmul %224, %225, %cst_86 {dimension_numbers = #tpu.dot_dimension_numbers<[1], [1], [0], [0], [0, 0, 1, 0], [], []>} : vector<8x256xf32>, vector<8x256xf32>, vector<8x8xf32> -> vector<8x8xf32>
    %227 = arith.mulf %226, %29 : vector<8x8xf32>
    %cst_87 = arith.constant dense<0.000000e+00> : vector<8x8xf32>
    %228 = tpu.matmul %28, %227, %cst_87 {dimension_numbers = #tpu.dot_dimension_numbers<[1], [0], [0], [1], [0, 0, 1, 1], [], []>} : vector<8x8xf32>, vector<8x8xf32>, vector<8x8xf32> -> vector<8x8xf32>
    %229 = vector.extract_strided_slice %222 {offsets = [0, 0], sizes = [8, 256], strides = [1, 1]} : vector<8x512xf32> to vector<8x256xf32>
    %cst_88 = arith.constant dense<0.000000e+00> : vector<8x256xf32>
    %230 = tpu.matmul %228, %229, %cst_88 {dimension_numbers = #tpu.dot_dimension_numbers<[1], [0], [0], [1], [0, 0, 1, 1], [], []>} : vector<8x8xf32>, vector<8x256xf32>, vector<8x256xf32> -> vector<8x256xf32>
    %231 = vector.broadcast %34 : vector<8x1xf32> to vector<8x256xf32>
    %232 = arith.addf %230, %231 : vector<8x256xf32>
    %233 = arith.addf %232, %223 : vector<8x256xf32>
    %234 = vector.extract_strided_slice %108 {offsets = [0, 0], sizes = [8, 256], strides = [1, 1]} : vector<8x512xf32> to vector<8x256xf32>
    %235 = arith.addf %233, %234 : vector<8x256xf32>
    %cst_89 = arith.constant 0.000000e+00 : f32
    %236 = vector.broadcast %cst_89 : f32 to vector<8x256xf32>
    %237 = arith.cmpf oge, %235, %236 : vector<8x256xf32>
    %cst_90 = arith.constant 2.000000e-01 : f32
    %238 = vector.broadcast %cst_90 : f32 to vector<8x256xf32>
    %239 = arith.mulf %238, %235 : vector<8x256xf32>
    %240 = arith.select %237, %235, %239 : vector<8x256xi1>, vector<8x256xf32>
    %c0_91 = arith.constant 0 : index
    %c0_92 = arith.constant 0 : index
    %241 = vector.load %arg4[%c0_91, %c0_92] : memref<8x512xf32, #tpu.memory_space<vmem>>, vector<8x256xf32>
    tpu.vector_store %arg4[%c0_91, %c0_92], %240 {strides = array<i32>} : memref<8x512xf32, #tpu.memory_space<vmem>>, vector<8x256xf32>,
    %242 = vector.extract_strided_slice %169 {offsets = [0, 256], sizes = [8, 256], strides = [1, 1]} : vector<8x512xf32> to vector<8x256xf32>
    %243 = vector.extract_strided_slice %175 {offsets = [0, 256], sizes = [8, 256], strides = [1, 1]} : vector<8x512xf32> to vector<8x256xf32>
    %244 = vector.extract_strided_slice %198 {offsets = [0, 256], sizes = [8, 256], strides = [1, 1]} : vector<8x512xf32> to vector<8x256xf32>
    %cst_93 = arith.constant dense<0.000000e+00> : vector<8x8xf32>
    %245 = tpu.matmul %243, %244, %cst_93 {dimension_numbers = #tpu.dot_dimension_numbers<[1], [1], [0], [0], [0, 0, 1, 0], [], []>} : vector<8x256xf32>, vector<8x256xf32>, vector<8x8xf32> -> vector<8x8xf32>
    %246 = arith.mulf %245, %29 : vector<8x8xf32>
    %cst_94 = arith.constant dense<0.000000e+00> : vector<8x8xf32>
    %247 = tpu.matmul %28, %246, %cst_94 {dimension_numbers = #tpu.dot_dimension_numbers<[1], [0], [0], [1], [0, 0, 1, 1], [], []>} : vector<8x8xf32>, vector<8x8xf32>, vector<8x8xf32> -> vector<8x8xf32>
    %248 = vector.extract_strided_slice %222 {offsets = [0, 256], sizes = [8, 256], strides = [1, 1]} : vector<8x512xf32> to vector<8x256xf32>
    %cst_95 = arith.constant dense<0.000000e+00> : vector<8x256xf32>
    %249 = tpu.matmul %247, %248, %cst_95 {dimension_numbers = #tpu.dot_dimension_numbers<[1], [0], [0], [1], [0, 0, 1, 1], [], []>} : vector<8x8xf32>, vector<8x256xf32>, vector<8x256xf32> -> vector<8x256xf32>
    %250 = vector.broadcast %34 : vector<8x1xf32> to vector<8x256xf32>
    %251 = arith.addf %249, %250 : vector<8x256xf32>
    %252 = arith.addf %251, %242 : vector<8x256xf32>
    %253 = vector.extract_strided_slice %108 {offsets = [0, 256], sizes = [8, 256], strides = [1, 1]} : vector<8x512xf32> to vector<8x256xf32>
    %254 = arith.addf %252, %253 : vector<8x256xf32>
    %cst_96 = arith.constant 0.000000e+00 : f32
    %255 = vector.broadcast %cst_96 : f32 to vector<8x256xf32>
    %256 = arith.cmpf oge, %254, %255 : vector<8x256xf32>
    %cst_97 = arith.constant 2.000000e-01 : f32
    %257 = vector.broadcast %cst_97 : f32 to vector<8x256xf32>
    %258 = arith.mulf %257, %254 : vector<8x256xf32>
    %259 = arith.select %256, %254, %258 : vector<8x256xi1>, vector<8x256xf32>
    %c0_98 = arith.constant 0 : index
    %c256 = arith.constant 256 : index
    %260 = vector.load %arg4[%c0_98, %c256] : memref<8x512xf32, #tpu.memory_space<vmem>>, vector<8x256xf32>
    tpu.vector_store %arg4[%c0_98, %c256], %259 {strides = array<i32>} : memref<8x512xf32, #tpu.memory_space<vmem>>, vector<8x256xf32>,
    return
  }
}

</mosaic_0001>

<bundles_post_ra>
// kernel: resblock_forward.1
= control target key start
LH: loop header
LB: loop body
LE: loop exit
PB: predicated region body
PF: predicated region fallthrough
CT: control target
= control target key end

     0   :  { %v1918_v2 = vmov 0.0   ;;  %s1920_s19 = smov 112   ;;  %s1921_s20 = smov 113   ;;  %v17_v5 = vlaneseq  ;;  %s2675_s0 = inlined_call_operand.vmem [shape: f32[4,512], index: 0, kind: input, shape index: {}]   ;;  %s2676_s1 = inlined_call_operand.vmem [shape: f32[24,72], index: 1, kind: input, shape index: {}]   ;;  %s2677_s3 = inlined_call_operand.vmem [shape: f32[16,13], index: 3, kind: input, shape index: {}]   ;;  %s2678_s2 = inlined_call_operand.vmem [shape: f32[24,9], index: 2, kind: input, shape index: {}]   ;;  %s2679_s4 = inlined_call_operand.vmem [shape: f32[8,512], index: 4, kind: output, shape index: {}]  }
   0x1   :  { %v1961_v0 = vld [vmem:[%s2675_s0 + $0x8] sm:$0xff]  ;;  %v1966_v1 = vld [vmem:[%s2675_s0] sm:$0xff]  ;;  %105 = vst [vmem:[#allocation2 + $0x100] sm:$0xff] %v1918_v2  ;;  %106 = vst [vmem:[#allocation2] sm:$0xff] %v1918_v2  ;;  %412 = vmatprep.mubr.f32.mxu0 %v1918_v2  ;;  %489 = vmatprep.mubr.f32.mxu1 %v1918_v2  ;;  %s1919_s0 = smov 111   ;;  %s1922_s21 = smov 127  }
   0x2   :  { %73 = vst [vmem:[#allocation2 + $0xb0] sm:$0xff] %v1918_v2  ;;  %74 = vst [vmem:[#allocation2 + $0xd0] sm:$0xff] %v1918_v2  ;;  %282 = vrot.lane.b32.xlu0 %v1961_v0, %s1919_s0  ;;  %278 = vrot.lane.b32.xlu1 %v1966_v1, %s1919_s0  ;;  %v111_v3 = vcombine.high %v1966_v1, %v1966_v1  ;;  %v112_v4 = vcombine.high %v1961_v0, %v1961_v0  ;;  %s1923_s22 = smov 1   ;;  %s1924_s23 = smov 15   ;;  %v2061_v6 = vand.u32 127, %v17_v5 }
   0x3   :  { %75 = vst [vmem:[#allocation2 + $0x10] sm:$0xff] %v1918_v2  ;;  %76 = vst [vmem:[#allocation2 + $0x48] sm:$0xff] %v1918_v2  ;;  %s1925_s24 = smov 16   ;;  %s1926_s25 = smov 17  }
   0x4   :  { %77 = vst [vmem:[#allocation2 + $0x108] sm:$0xff] %v1918_v2  ;;  %78 = vst [vmem:[#allocation2 + $0x68] sm:$0xff] %v1918_v2  ;;  %v19_v7 = vadd.s32 128, %v2061_v6  ;;  %v26_v8 = vshra.s32 %v2061_v6, 4  ;;  %v22_v10 = vand.u32 15, %v2061_v6  ;;  %v2071_v14 = vadd.s32 256, %v2061_v6 }
   0x5   :  { %79 = vst [vmem:[#allocation2 + $0x30] sm:$0xff] %v1918_v2  ;;  %80 = vst [vmem:[#allocation2 + $0x18] sm:$0xff] %v1918_v2  ;;  %v2074_v15 = vadd.s32 384, %v2061_v6  ;;  %vm286_vm4 = vcmp.lt.s32.totalorder %v2061_v6, 111  ;;  %vm265_vm6 = vcmp.lt.s32.totalorder %v2061_v6, 112  ;;  %vm240_vm12 = vcmp.lt.s32.totalorder %v2061_v6, 113 }
   0x6   :  { %81 = vst [vmem:[#allocation2 + $0x80] sm:$0xff] %v1918_v2  ;;  %82 = vst [vmem:[#allocation2 + $0x110] sm:$0xff] %v1918_v2  ;;  %259 = vrot.lane.b32.xlu1 %v111_v3, %s1920_s19  ;;  %280 = vrot.lane.b32.xlu0 %v111_v3, %s1919_s0  ;;  %v27_v9 = vshra.s32 %v19_v7, 4  ;;  %v23_v11 = vand.u32 15, %v19_v7  ;;  %v2066_v12 = vand.u32 15, %v26_v8  ;;  %vm58_vm2 = vcmp.lt.s32.totalorder %v22_v10, 15 }
   0x7   :  { %83 = vst [vmem:[#allocation2 + $0x118] sm:$0xff] %v1918_v2  ;;  %84 = vst [vmem:[#allocation2 + $0x98] sm:$0xff] %v1918_v2  ;;  %v2085_v18 = vsel %vm58_vm2, 1.0, %v1918_v2  ;;  %v28_v22 = vshra.s32 %v2071_v14, 4  ;;  %v29_v23 = vshra.s32 %v2074_v15, 4  ;;  %v24_v26 = vand.u32 15, %v2071_v14 }
   0x8   :  { %85 = vst [vmem:[#allocation2 + $0xf8] sm:$0xff] %v1918_v2  ;;  %86 = vst [vmem:[#allocation2 + $0x38] sm:$0xff] %v1918_v2  ;;  %v2068_v13 = vand.u32 15, %v27_v9  ;;  %vm42_vm0 = vcmp.lt.s32.totalorder %v2066_v12, 15  ;;  %vm59_vm3 = vcmp.lt.s32.totalorder %v23_v11, 15  ;;  %vm51_vm5 = vcmp.gt.s32.totalorder %v23_v11, 0 }
   0x9   :  { %87 = vst [vmem:[#allocation2 + $0x8] sm:$0xff] %v1918_v2  ;;  %88 = vst [vmem:[#allocation2 + $0x78] sm:$0xff] %v1918_v2  ;;  %v2079_v16 = vsel %vm42_vm0, 1.0, %v1918_v2  ;;  %v2088_v19 = vsel %vm59_vm3, 1.0, %v1918_v2  ;;  %v25_v29 = vand.u32 15, %v2074_v15  ;;  %v2103_v30 = vand.u32 15, %v28_v22 }
   0xa   :  { %89 = vst [vmem:[#allocation2 + $0x20] sm:$0xff] %v1918_v2  ;;  %90 = vst [vmem:[#allocation2 + $0xc8] sm:$0xff] %v1918_v2  ;;  %257 = vrot.lane.b32.xlu1 %v1966_v1, %s1920_s19  ;;  %261 = vrot.lane.b32.xlu0 %v1961_v0, %s1920_s19  ;;  %vm43_vm1 = vcmp.lt.s32.totalorder %v2068_v13, 15  ;;  %v2095_v24 = vmul.f32 %v2085_v18, %v2079_v16  ;;  %v2105_v31 = vand.u32 15, %v29_v23  ;;  %v2115_v36 = vsel %vm51_vm5, 1.0, %v1918_v2 }
   0xb   :  { %91 = vst [vmem:[#allocation2 + $0x90] sm:$0xff] %v1918_v2  ;;  %92 = vst [vmem:[#allocation2 + $0xa0] sm:$0xff] %v1918_v2  ;;  %v2082_v17 = vsel %vm43_vm1, 1.0, %v1918_v2  ;;  %vm50_vm7 = vcmp.gt.s32.totalorder %v22_v10, 0  ;;  %vm44_vm8 = vcmp.lt.s32.totalorder %v2103_v30, 15  ;;  %vm60_vm10 = vcmp.lt.s32.totalorder %v24_v26, 15 }
   0xc   :  { %93 = vst [vmem:[#allocation2 + $0x70] sm:$0xff] %v1918_v2  ;;  %94 = vst [vmem:[#allocation2 + $0x58] sm:$0xff] %v1918_v2  ;;  %v2099_v25 = vmul.f32 %v2088_v19, %v2082_v17  ;;  %vm45_vm9 = vcmp.lt.s32.totalorder %v2105_v31, 15  ;;  %vm61_vm11 = vcmp.lt.s32.totalorder %v25_v29, 15  ;;  %v2131_v43 = vmul.f32 %v2115_v36, %v2082_v17 }
   0xd   :  { %95 = vst [vmem:[#allocation2 + $0xe0] sm:$0xff] %v1918_v2  ;;  %96 = vst [vmem:[#allocation2 + $0x60] sm:$0xff] %v1918_v2  ;;  %v2134_v44 = vsel %vm50_vm7, 1.0, %v1918_v2  ;;  %v2137_v45 = vsel %vm44_vm8, 1.0, %v1918_v2  ;;  %v2140_v46 = vsel %vm45_vm9, 1.0, %v1918_v2  ;;  %v2143_v47 = vsel %vm60_vm10, 1.0, %v1918_v2 }
   0xe   :  { %97 = vst [vmem:[#allocation2 + $0xa8] sm:$0xff] %v1918_v2  ;;  %98 = vst [vmem:[#allocation2 + $0x88] sm:$0xff] %v1918_v2  ;;  %236 = vrot.lane.b32.xlu1 %v1961_v0, %s1921_s20  ;;  %234 = vrot.lane.b32.xlu0 %v111_v3, %s1921_s20  ;;  %v2146_v48 = vsel %vm61_vm11, 1.0, %v1918_v2  ;;  %v2153_v53 = vmul.f32 %v2134_v44, %v2079_v16  ;;  %v2157_v54 = vmul.f32 %v2143_v47, %v2137_v45  ;;  %vm341_vm10 = vcmask 588800  }
   0xf   :  { %99 = vst [vmem:[#allocation2 + $0xd8] sm:$0xff] %v1918_v2  ;;  %100 = vst [vmem:[#allocation2 + $0xc0] sm:$0xff] %v1918_v2  ;;  %v2161_v55 = vmul.f32 %v2146_v48, %v2140_v46  ;;  %vm219_vm13 = vcmp.lt.s32.totalorder %v2061_v6, 127  ;;  %vm52_vm14 = vcmp.gt.s32.totalorder %v24_v26, 0  ;;  %vm53_vm15 = vcmp.gt.s32.totalorder %v25_v29, 0 }
  0x10   :  { %101 = vst [vmem:[#allocation2 + $0x50] sm:$0xff] %v1918_v2  ;;  %102 = vst [vmem:[#allocation2 + $0xf0] sm:$0xff] %v1918_v2  ;;  %v2177_v11 = vsel %vm52_vm14, 1.0, %v1918_v2  ;;  %v2180_v15 = vsel %vm53_vm15, 1.0, %v1918_v2  ;;  %vm194_vm0 = vcmp.lt.s32.totalorder %v2061_v6, 1  ;;  %vm34_vm1 = vcmp.gt.s32.totalorder %v2066_v12, 0 }
  0x11   :  { %103 = vst [vmem:[#allocation2 + $0xb8] sm:$0xff] %v1918_v2  ;;  %104 = vst [vmem:[#allocation2 + $0x28] sm:$0xff] %v1918_v2  ;;  %vm35_vm2 = vcmp.gt.s32.totalorder %v2068_v13, 0  ;;  %vm169_vm3 = vcmp.lt.s32.totalorder %v2061_v6, 15  ;;  %vm148_vm5 = vcmp.lt.s32.totalorder %v2061_v6, 16  ;;  %vm36_vm7 = vcmp.gt.s32.totalorder %v2103_v30, 0 }
  0x12   :  { %107 = vst [vmem:[#allocation2 + $0x40] sm:$0xff] %v1918_v2  ;;  %108 = vst [vmem:[#allocation2 + $0xe8] sm:$0xff] %v1918_v2  ;;  %232 = vrot.lane.b32.xlu1 %v1966_v1, %s1921_s20  ;;  %284 = vrot.lane.b32.xlu0 %v112_v4, %s1919_s0  ;;  %vm37_vm8 = vcmp.gt.s32.totalorder %v2105_v31, 0  ;;  %vm123_vm9 = vcmp.lt.s32.totalorder %v2061_v6, 17 }
  0x13   :  { %207 = vst [vmem:[#allocation2 + $0x20] sm:$0xf] %v1966_v1  ;;  %209 = vst [vmem:[#allocation2 + $0x90] sm:$0xf] %v1961_v0 }
  0x14   :  { %208 = vst [vmem:[#allocation2 + $0xc8] sm:$0xf] %v111_v3  ;;  %210 = vst [vmem:[#allocation2 + $0xa0] sm:$0xf] %v112_v4 }
  0x16   :  { %215 = vrot.lane.b32.xlu1 %v1961_v0, %s1922_s21  ;;  %213 = vrot.lane.b32.xlu0 %v111_v3, %s1922_s21 }
  0x1a   :  { %211 = vrot.lane.b32.xlu1 %v1966_v1, %s1922_s21  ;;  %263 = vrot.lane.b32.xlu0 %v112_v4, %s1920_s19  ;;  %v321_v12 = vld [vmem:[#allocation2 + $0x20] sm:$0xff] }
  0x1e   :  { %186 = vrot.lane.b32.xlu1 %v1966_v1, %s1923_s22  ;;  %238 = vrot.lane.b32.xlu0 %v112_v4, %s1921_s20 }
  0x22   :  { %217 = vrot.lane.b32.xlu1 %v112_v4, %s1922_s21  ;;  %188 = vrot.lane.b32.xlu0 %v111_v3, %s1923_s22 }
  0x26   :  { %161 = vrot.lane.b32.xlu1 %v1966_v1, %s1924_s23  ;;  %192 = vrot.lane.b32.xlu0 %v112_v4, %s1923_s22 }
  0x2a   :  { %167 = vrot.lane.b32.xlu1 %v112_v4, %s1924_s23  ;;  %163 = vrot.lane.b32.xlu0 %v111_v3, %s1924_s23 }
  0x2e   :  { %142 = vrot.lane.b32.xlu1 %v111_v3, %s1925_s24  ;;  %140 = vrot.lane.b32.xlu0 %v1966_v1, %s1925_s24 }
  0x32   :  { %146 = vrot.lane.b32.xlu1 %v112_v4, %s1925_s24  ;;  %190 = vrot.lane.b32.xlu0 %v1961_v0, %s1923_s22 }
  0x36   :  { %117 = vrot.lane.b32.xlu1 %v111_v3, %s1926_s25  ;;  %115 = vrot.lane.b32.xlu0 %v1966_v1, %s1926_s25 }
  0x3a   :  { %121 = vrot.lane.b32.xlu1 %v112_v4, %s1926_s25  ;;  %165 = vrot.lane.b32.xlu0 %v1961_v0, %s1924_s23 }
  0x3e   :  { %119 = vrot.lane.b32.xlu1 %v1961_v0, %s1926_s25  ;;  %144 = vrot.lane.b32.xlu0 %v1961_v0, %s1925_s24 }
  0x74   :  { %v283_v20 = vpop.permute.xlu0 %282  ;;  %v279_v21 = vpop.permute.xlu1 %278 }
  0x78   :  { %v260_v27 = vpop.permute.xlu1 %259  ;;  %v281_v28 = vpop.permute.xlu0 %280 }
  0x79   :  { %v288_v32 = vsel %vm286_vm4, %v281_v28, %v283_v20  ;;  %v289_v33 = vsel %vm286_vm4, %v279_v21, %v281_v28 }
  0x7a   :  { %v295_v34 = vmul.f32 %v2095_v24, %v289_v33  ;;  %v296_v35 = vmul.f32 %v2099_v25, %v288_v32  ;;  %v2198_v33 = vmul.f32 %v2180_v15, %v2140_v46 }
  0x7c   :  { %299 = vst [vmem:[#allocation2 + $0x100] sm:$0xf] %v295_v34  ;;  %300 = vst [vmem:[#allocation2] sm:$0xf] %v296_v35  ;;  %v2117_v37 = vpop.permute.xlu1 %257  ;;  %v262_v38 = vpop.permute.xlu0 %261 }
  0x7d   :  { %v268_v39 = vsel %vm265_vm6, %v2117_v37, %v260_v27  ;;  %v267_v40 = vsel %vm265_vm6, %v260_v27, %v262_v38  ;;  %v2191_v27 = vmul.f32 %v2177_v11, %v2137_v45 }
  0x7e   :  { %v270_v41 = vmul.f32 %v268_v39, %v2079_v16  ;;  %v271_v42 = vmul.f32 %v267_v40, %v2082_v17 }
  0x80   :  { %274 = vst [vmem:[#allocation2 + $0x50] sm:$0xf] %v270_v41  ;;  %275 = vst [vmem:[#allocation2 + $0xf0] sm:$0xf] %v271_v42  ;;  %v237_v49 = vpop.permute.xlu1 %236  ;;  %v235_v50 = vpop.permute.xlu0 %234 }
  0x81   :  { %v242_v51 = vsel %vm240_vm12, %v235_v50, %v237_v49 }
  0x82   :  { %v250_v52 = vmul.f32 %v2131_v43, %v242_v51 }
  0x83   :  { %v338_v56 = vld [vmem:[#allocation2] sm:$0xff] }
  0x84   :  { %v337_v57 = vld [vmem:[#allocation2 + $0x100] sm:$0xff]  ;;  %254 = vst [vmem:[#allocation2 + $0x88] sm:$0xf] %v250_v52  ;;  %v233_v58 = vpop.permute.xlu1 %232  ;;  %362 = vmatprep.subr.mxu0 %v338_v56  ;;  %v285_v59 = vpop.permute.xlu0 %284 }
  0x85   :  { %v243_v60 = vsel %vm240_vm12, %v233_v58, %v235_v50  ;;  %v287_v61 = vsel %vm286_vm4, %v283_v20, %v285_v59  ;;  %v290_v62 = vsel %vm286_vm4, %v285_v59, %v279_v21  ;;  %363 = vmatpush1.msra.mxu0 %v337_v57 }
  0x86   :  { %v249_v63 = vmul.f32 %v2153_v53, %v243_v60  ;;  %v297_v0 = vmul.f32 %v2157_v54, %v287_v61  ;;  %v298_v1 = vmul.f32 %v2161_v55, %v290_v62  ;;  %v322_v62 = vld [vmem:[#allocation2 + $0xc8] sm:$0xff] }
  0x87   :  { %v334_v3 = vld [vmem:[#allocation2 + $0xf0] sm:$0xff] }
  0x88   :  { %v333_v4 = vld [vmem:[#allocation2 + $0x50] sm:$0xff]  ;;  %253 = vst [vmem:[#allocation2 + $0xa8] sm:$0xf] %v249_v63  ;;  %301 = vst [vmem:[#allocation2 + $0x40] sm:$0xf] %v297_v0  ;;  %v216_v7 = vpop.permute.xlu1 %215  ;;  %364 = vmatprep.subr.mxu0 %v334_v3  ;;  %v214_v8 = vpop.permute.xlu0 %213  ;;  %v2225_v3 = vsel %vm35_vm2, 1.0, %v1918_v2 }
  0x89   :  { %302 = vst [vmem:[#allocation2 + $0xe8] sm:$0xf] %v298_v1  ;;  %v221_v9 = vsel %vm219_vm13, %v214_v8, %v216_v7  ;;  %365 = vmatpush1.msra.mxu0 %v333_v4  ;;  %v2222_v1 = vsel %vm34_vm1, 1.0, %v1918_v2  ;;  %v2270_v31 = vmul.f32 %v2115_v36, %v2225_v3 }
  0x8a   :  { %v225_v10 = vmul.f32 %v221_v9, %v2088_v19 }
  0x8b   :  { %v330_v14 = vld [vmem:[#allocation2 + $0x88] sm:$0xff] }
  0x8c   :  { %229 = vst [vmem:[#allocation2 + $0x58] sm:$0xf] %v225_v10  ;;  %v212_v20 = vpop.permute.xlu1 %211  ;;  %366 = vmatprep.subr.mxu0 %v330_v14  ;;  %v264_v21 = vpop.permute.xlu0 %263  ;;  %v2233_v10 = vmul.f32 %v2085_v18, %v2222_v1  ;;  %v2237_v14 = vmul.f32 %v2088_v19, %v2225_v3 }
  0x8d   :  { %v222_v22 = vsel %vm219_vm13, %v212_v20, %v214_v8  ;;  %v266_v23 = vsel %vm265_vm6, %v262_v38, %v264_v21  ;;  %v269_v26 = vsel %vm265_vm6, %v264_v21, %v2117_v37 }
  0x8e   :  { %v224_v28 = vmul.f32 %v222_v22, %v2085_v18  ;;  %v272_v29 = vmul.f32 %v266_v23, %v2137_v45  ;;  %v273_v32 = vmul.f32 %v269_v26, %v2140_v46 }
  0x8f   :  { %v329_v34 = vld [vmem:[#allocation2 + $0xa8] sm:$0xff]  ;;  %v339_v38 = vld [vmem:[#allocation2 + $0x40] sm:$0xff] }
  0x90   :  { %v340_v35 = vld [vmem:[#allocation2 + $0xe8] sm:$0xff]  ;;  %228 = vst [vmem:[#allocation2 + $0x70] sm:$0xf] %v224_v28  ;;  %276 = vst [vmem:[#allocation2 + $0xb8] sm:$0xf] %v272_v29  ;;  %v187_v37 = vpop.permute.xlu1 %186  ;;  %367 = vmatpush1.msra.mxu0 %v329_v34  ;;  %v239_v39 = vpop.permute.xlu0 %238  ;;  %v324_v34 = vld [vmem:[#allocation2 + $0xa0] sm:$0xff] }
  0x91   :  { %277 = vst [vmem:[#allocation2 + $0x28] sm:$0xf] %v273_v32  ;;  %439 = vmatprep.subr.mxu1 %v340_v35  ;;  %v241_v40 = vsel %vm240_vm12, %v237_v49, %v239_v39  ;;  %v244_v41 = vsel %vm240_vm12, %v239_v39, %v233_v58 }
  0x92   :  { %440 = vmatpush1.msra.mxu1 %v339_v38  ;;  %v251_v42 = vmul.f32 %v2191_v27, %v241_v40  ;;  %v252_v50 = vmul.f32 %v2198_v33, %v244_v41  ;;  %v323_v41 = vld [vmem:[#allocation2 + $0x90] sm:$0xff] }
  0x93   :  { %v326_v51 = vld [vmem:[#allocation2 + $0x58] sm:$0xff] }
  0x94   :  { %255 = vst [vmem:[#allocation2 + $0xd8] sm:$0xf] %v251_v42  ;;  %256 = vst [vmem:[#allocation2 + $0xc0] sm:$0xf] %v252_v50  ;;  %v218_v52 = vpop.permute.xlu1 %217  ;;  %368 = vmatprep.subr.mxu0 %v326_v51  ;;  %v2207_v56 = vpop.permute.xlu0 %188 }
  0x95   :  { %v220_v49 = vsel %vm219_vm13, %v216_v7, %v218_v52  ;;  %v223_v57 = vsel %vm219_vm13, %v218_v52, %v212_v20  ;;  %v197_v58 = vsel %vm194_vm0, %v187_v37, %v2207_v56 }
  0x96   :  { %v226_v59 = vmul.f32 %v220_v49, %v2143_v47  ;;  %v227_v60 = vmul.f32 %v223_v57, %v2146_v48  ;;  %v200_v61 = vmul.f32 %v197_v58, %v2115_v36 }
  0x97   :  { %v325_v63 = vld [vmem:[#allocation2 + $0x70] sm:$0xff]  ;;  %v335_v0 = vld [vmem:[#allocation2 + $0xb8] sm:$0xff] }
  0x98   :  { %v336_v13 = vld [vmem:[#allocation2 + $0x28] sm:$0xff]  ;;  %230 = vst [vmem:[#allocation2 + $0xe0] sm:$0xf] %v226_v59  ;;  %231 = vst [vmem:[#allocation2 + $0x60] sm:$0xf] %v227_v60  ;;  %v162_v4 = vpop.permute.xlu1 %161  ;;  %369 = vmatpush1.msra.mxu0 %v325_v63  ;;  %v193_v7 = vpop.permute.xlu0 %192  ;;  %v2273_v63 = vsel %vm36_vm7, 1.0, %v1918_v2 }
  0x99   :  { %204 = vst [vmem:[#allocation2 + $0x38] sm:$0xf] %v200_v61  ;;  %441 = vmatprep.subr.mxu1 %v336_v13  ;;  %v198_v8 = vsel %vm194_vm0, %v193_v7, %v187_v37  ;;  %370 = vmatprep.subr.mxu0 %v322_v62  ;;  %v2276_v13 = vsel %vm37_vm8, 1.0, %v1918_v2 }
  0x9a   :  { %442 = vmatpush1.msra.mxu1 %v335_v0  ;;  %v199_v9 = vmul.f32 %v198_v8, %v2134_v44  ;;  %371 = vmatpush1.msra.mxu0 %v321_v12  ;;  %v2283_v8 = vmul.f32 %v2134_v44, %v2222_v1 }
  0x9b   :  { %v332_v20 = vld [vmem:[#allocation2 + $0xc0] sm:$0xff]  ;;  %v331_v21 = vld [vmem:[#allocation2 + $0xd8] sm:$0xff] }
  0x9c   :  { %203 = vst [vmem:[#allocation2 + $0xf8] sm:$0xf] %v199_v9  ;;  %v2239_v22 = vpop.permute.xlu1 %167  ;;  %443 = vmatprep.subr.mxu1 %v332_v20  ;;  %v164_v23 = vpop.permute.xlu0 %163  ;;  %v2287_v9 = vmul.f32 %v2143_v47, %v2273_v63  ;;  %v2291_v20 = vmul.f32 %v2146_v48, %v2276_v13 }
  0x9d   :  { %v173_v26 = vsel %vm169_vm3, %v2239_v22, %v162_v4  ;;  %v172_v28 = vsel %vm169_vm3, %v162_v4, %v164_v23  ;;  %444 = vmatpush1.msra.mxu1 %v331_v21 }
  0x9e   :  { %v178_v29 = vmul.f32 %v2233_v10, %v173_v26  ;;  %v179_v32 = vmul.f32 %v2237_v14, %v172_v28 }
  0x9f   :  { %v328_v35 = vld [vmem:[#allocation2 + $0x60] sm:$0xff] }
  0xa0   :  { %v318_v38 = vld [vmem:[#allocation2 + $0x38] sm:$0xff]  ;;  %v327_v37 = vld [vmem:[#allocation2 + $0xe0] sm:$0xff]  ;;  %182 = vst [vmem:[#allocation2 + $0x80] sm:$0xf] %v178_v29  ;;  %183 = vst [vmem:[#allocation2 + $0x110] sm:$0xf] %v179_v32  ;;  %v2249_v39 = vpop.permute.xlu1 %142  ;;  %445 = vmatprep.subr.mxu1 %v328_v35  ;;  %v141_v40 = vpop.permute.xlu0 %140  ;;  %v2302_v35 = vmul.f32 %v2177_v11, %v2273_v63 }
  0xa1   :  { %372 = vmatprep.subr.mxu0 %v318_v38  ;;  %v151_v42 = vsel %vm148_vm5, %v141_v40, %v2249_v39  ;;  %446 = vmatpush1.msra.mxu1 %v327_v37 }
  0xa2   :  { %v154_v50 = vmul.f32 %v151_v42, %v2225_v3  ;;  %447 = vmatprep.subr.mxu1 %v324_v34 }
  0xa3   :  { %v317_v51 = vld [vmem:[#allocation2 + $0xf8] sm:$0xff]  ;;  %448 = vmatpush1.msra.mxu1 %v323_v41  ;;  %v2309_v41 = vmul.f32 %v2180_v15, %v2276_v13 }
  0xa4   :  { %158 = vst [vmem:[#allocation2 + $0x68] sm:$0xf] %v154_v50  ;;  %v147_v52 = vpop.permute.xlu1 %146  ;;  %v191_v49 = vpop.permute.xlu0 %190  ;;  %373 = vmatpush1.msra.mxu0 %v317_v51 }
  0xa5   :  { %v152_v57 = vsel %vm148_vm5, %v147_v52, %v141_v40  ;;  %v195_v58 = vsel %vm194_vm0, %v191_v49, %v193_v7  ;;  %v196_v59 = vsel %vm194_vm0, %v2207_v56, %v191_v49 }
  0xa6   :  { %v153_v60 = vmul.f32 %v152_v57, %v2222_v1  ;;  %v201_v61 = vmul.f32 %v196_v59, %v2177_v11  ;;  %v202_v30 = vmul.f32 %v195_v58, %v2180_v15 }
  0xa7   :  { %v314_v62 = vld [vmem:[#allocation2 + $0x110] sm:$0xff]  ;;  %v313_v12 = vld [vmem:[#allocation2 + $0x80] sm:$0xff] }
  0xa8   :  { %157 = vst [vmem:[#allocation2 + $0x108] sm:$0xf] %v153_v60  ;;  %205 = vst [vmem:[#allocation2 + $0x8] sm:$0xf] %v201_v61  ;;  %v118_v56 = vpop.permute.xlu1 %117  ;;  %v116_v0 = vpop.permute.xlu0 %115  ;;  %374 = vmatprep.subr.mxu0 %v314_v62 }
  0xa9   :  { %206 = vst [vmem:[#allocation2 + $0x78] sm:$0xf] %v202_v30  ;;  %v126_v4 = vsel %vm123_vm9, %v116_v0, %v118_v56  ;;  %375 = vmatpush1.msra.mxu0 %v313_v12 }
  0xaa   :  { %v133_v7 = vmul.f32 %v2270_v31, %v126_v4 }
  0xab   :  { %v310_v21 = vld [vmem:[#allocation2 + $0x68] sm:$0xff] }
  0xac   :  { %137 = vst [vmem:[#allocation2 + $0xd0] sm:$0xf] %v133_v7  ;;  %v122_v26 = vpop.permute.xlu1 %121  ;;  %v166_v28 = vpop.permute.xlu0 %165  ;;  %376 = vmatprep.subr.mxu0 %v310_v21 }
  0xad   :  { %v127_v29 = vsel %vm123_vm9, %v122_v26, %v116_v0  ;;  %v170_v32 = vsel %vm169_vm3, %v166_v28, %v2239_v22  ;;  %v171_v34 = vsel %vm169_vm3, %v164_v23, %v166_v28 }
  0xae   :  { %v132_v38 = vmul.f32 %v2283_v8, %v127_v29  ;;  %v180_v37 = vmul.f32 %v2287_v9, %v171_v34  ;;  %v181_v40 = vmul.f32 %v2291_v20, %v170_v32 }
  0xaf   :  { %v309_v50 = vld [vmem:[#allocation2 + $0x108] sm:$0xff] }
  0xb0   :  { %v320_v42 = vld [vmem:[#allocation2 + $0x78] sm:$0xff]  ;;  %v319_v22 = vld [vmem:[#allocation2 + $0x8] sm:$0xff]  ;;  %136 = vst [vmem:[#allocation2 + $0xb0] sm:$0xf] %v132_v38  ;;  %184 = vst [vmem:[#allocation2 + $0x118] sm:$0xf] %v180_v37  ;;  %v120_v23 = vpop.permute.xlu1 %119  ;;  %v145_v51 = vpop.permute.xlu0 %144  ;;  %377 = vmatpush1.msra.mxu0 %v309_v50 }
  0xb1   :  { %185 = vst [vmem:[#allocation2 + $0x98] sm:$0xf] %v181_v40  ;;  %449 = vmatprep.subr.mxu1 %v320_v42  ;;  %v124_v49 = vsel %vm123_vm9, %v120_v23, %v122_v26  ;;  %v125_v57 = vsel %vm123_vm9, %v118_v56, %v120_v23  ;;  %v149_v58 = vsel %vm148_vm5, %v145_v51, %v147_v52  ;;  %v303_v52 = vld [vmem:[%s2676_s1] sm:$0xff] }
  0xb2   :  { %v150_v59 = vsel %vm148_vm5, %v2249_v39, %v145_v51  ;;  %450 = vmatpush1.msra.mxu1 %v319_v22  ;;  %v134_v60 = vmul.f32 %v2302_v35, %v125_v57  ;;  %v135_v61 = vmul.f32 %v2309_v41, %v124_v49  ;;  %v156_v62 = vmul.f32 %v149_v58, %v2276_v13 }
  0xb3   :  { %v155_v30 = vmul.f32 %v150_v59, %v2273_v63  ;;  %v306_v12 = vld [vmem:[#allocation2 + $0xd0] sm:$0xff]  ;;  %v1927_v58 = vmov 8  }
  0xb4   :  { %138 = vst [vmem:[#allocation2 + $0x10] sm:$0xf] %v134_v60  ;;  %139 = vst [vmem:[#allocation2 + $0x48] sm:$0xf] %v135_v61  ;;  %378 = vmatprep.subr.mxu0 %v306_v12  ;;  %1864 = vset.pattern.permute.xlu1 %v1927_v58 }
  0xb5   :  { %159 = vst [vmem:[#allocation2 + $0x30] sm:$0xf] %v155_v30  ;;  %160 = vst [vmem:[#allocation2 + $0x18] sm:$0xf] %v156_v62 }
  0xb7   :  { %v305_v39 = vld [vmem:[#allocation2 + $0xb0] sm:$0xff]  ;;  %v315_v0 = vld [vmem:[#allocation2 + $0x118] sm:$0xff] }
  0xb8   :  { %v316_v56 = vld [vmem:[#allocation2 + $0x98] sm:$0xff]  ;;  %379 = vmatpush1.msra.mxu0 %v305_v39  ;;  %v1928_v39 = vmov 9  }
  0xb9   :  { %451 = vmatprep.subr.mxu1 %v316_v56  ;;  %1819 = vmatmul.mubr.msk.f32.vlgmr.msra.gmra.mxu0 %vm341_vm10, %v303_v52  ;;  %v2336_v56 = vld [vmem:[%s2677_s3] sm:$0xff] }
  0xba   :  { %452 = vmatpush1.msra.mxu1 %v315_v0  ;;  %418 = vmatprep.mubr.f32.mxu0 %v1918_v2 }
  0xbb   :  { %v308_v21 = vld [vmem:[#allocation2 + $0x48] sm:$0xff]  ;;  %v307_v26 = vld [vmem:[#allocation2 + $0x10] sm:$0xff]  ;;  %1865 = vset.pattern.permute.xlu0 %v1928_v39 }
  0xbc   :  { %v312_v4 = vld [vmem:[#allocation2 + $0x18] sm:$0xff]  ;;  %v311_v7 = vld [vmem:[#allocation2 + $0x30] sm:$0xff] }
  0xbd   :  { %453 = vmatprep.subr.mxu1 %v312_v4 }
  0xbe   :  { %454 = vmatpush1.msra.mxu1 %v311_v7 }
  0xbf   :  { %455 = vmatprep.subr.mxu1 %v308_v21 }
  0xc0   :  { %456 = vmatpush1.msra.mxu1 %v307_v26 }
  0xc1   :  { %1821 = vmatmul.mubr.msk.f32.vlgmr.msra.gmra.mxu1 %vm341_vm10, %v303_v52 }
  0xc2   :  { %495 = vmatprep.mubr.f32.mxu1 %v1918_v2 }
 0x179   :  { %v414_v28 = vpop.f32.mrf.mxu0 }
 0x17a   :  { %v514_v32 = vmul.f32 %v414_v28, %v414_v28 }
 0x17b   :  { %v416_v29 = vpop.f32.mrf.mxu0 }
 0x17c   :  { %v515_v34 = vmul.f32 %v416_v29, %v416_v29  ;;  %v502_v38 = vadd.f32 %v416_v29, %v414_v28 }
 0x17e   :  { %v522_v50 = vadd.f32 %v515_v34, %v514_v32 }
 0x181   :  { %v491_v37 = vpop.f32.mrf.mxu1 }
 0x182   :  { %v516_v40 = vmul.f32 %v491_v37, %v491_v37  ;;  %v503_v42 = vadd.f32 %v502_v38, %v491_v37 }
 0x183   :  { %v493_v22 = vpop.f32.mrf.mxu1 }
 0x184   :  { %v504_v23 = vadd.f32 %v503_v42, %v493_v22  ;;  %v517_v51 = vmul.f32 %v493_v22, %v493_v22  ;;  %v523_v49 = vadd.f32 %v522_v50, %v516_v40 }
 0x186   :  { %505 = vadd.xlane.f32.xlu0 %v504_v23  ;;  %v524_v57 = vadd.f32 %v523_v49, %v517_v51 }
 0x188   :  { %525 = vadd.xlane.f32.xlu1 %v524_v57 }
 0x20f   :  { %v506_v59 = vpop.xlane.xlu0 %505 }
 0x210   :  { %v512_v60 = vmul.f32 0.001953125, %v506_v59 }
 0x211   :  { %v526_v61 = vpop.xlane.xlu1 %525 }
 0x212   :  { %v534_v30 = vmul.f32 %v512_v60, %v512_v60  ;;  %v532_v62 = vmul.f32 0.001953125, %v526_v61 }
 0x214   :  { %v536_v12 = vsub.f32 %v532_v62, %v534_v30 }
 0x216   :  { %v538_v52 = vadd.f32 1e-05, %v536_v12 }
 0x218   :  { %1875 = vrsqrt.f32 %v538_v52 }
 0x225   :  { %v1876_v0 = vpop.eup %1875 }
 0x226   :  { %v542_v4 = vmul.f32 %v1876_v0, %v2336_v56 }
 0x228   :  { %546 = vperm.xlu1 %1864, %v542_v4   ;;  %v562_v7 = vmul.f32 %v542_v4, %v512_v60 }
 0x22a   :  { %566 = vrot.lane.b32.xlu0 %v562_v7, %s1923_s22 }
 0x29c   :  { %v567_v21 = vpop.permute.xlu0 %566 }
 0x29d   :  { %v572_v26 = vsub.f32 %v2336_v56, %v567_v21 }
 0x29f   :  { %576 = vperm.xlu0 %1865, %v572_v26  }
 0x2a3   :  { %v547_v32 = vpop.permute.xlu1 %546 }
 0x2a4   :  { %v554_v34 = vmul.f32 %v547_v32, %v414_v28  ;;  %v555_v38 = vmul.f32 %v547_v32, %v416_v29  ;;  %v556_v40 = vmul.f32 %v547_v32, %v491_v37  ;;  %v557_v42 = vmul.f32 %v547_v32, %v493_v22  ;;  %v304_v37 = vld [vmem:[%s2676_s1 + $0x8] sm:$0xff] }
 0x2a5   :  { %1820 = vmatmul.mubr.msk.f32.gmra.mxu0 %vm341_vm10, %v304_v37  ;;  %1822 = vmatmul.mubr.msk.f32.gmra.mxu1 %vm341_vm10, %v304_v37 }
 0x2a6   :  { %872 = vmatprep.mubr.f32.mxu0 %v1918_v2  ;;  %943 = vmatprep.mubr.f32.mxu1 %v1918_v2 }
 0x31a   :  { %v577_v50 = vpop.permute.xlu0 %576 }
 0x31b   :  { %v584_v23 = vadd.f32 %v577_v50, %v554_v34  ;;  %v585_v51 = vadd.f32 %v577_v50, %v555_v38  ;;  %v586_v49 = vadd.f32 %v577_v50, %v556_v40  ;;  %v587_v57 = vadd.f32 %v577_v50, %v557_v42 }
 0x31d   :  { %vm592_vm11 = vcmp.ge.f32.partialorder %v584_v23, 0.0  ;;  %vm593_vm14 = vcmp.ge.f32.partialorder %v585_v51, 0.0  ;;  %vm594_vm15 = vcmp.ge.f32.partialorder %v586_v49, 0.0  ;;  %vm595_vm1 = vcmp.ge.f32.partialorder %v587_v57, 0.0 }
 0x31e   :  { %v596_v59 = vmul.f32 0.2, %v584_v23  ;;  %v597_v60 = vmul.f32 0.2, %v585_v51  ;;  %v598_v61 = vmul.f32 0.2, %v586_v49 }
 0x31f   :  { %v599_v30 = vmul.f32 0.2, %v587_v57 }
 0x320   :  { %v2341_v62 = vsel %vm592_vm11, %v584_v23, %v596_v59  ;;  %v2343_v12 = vsel %vm593_vm14, %v585_v51, %v597_v60  ;;  %v2345_v28 = vsel %vm594_vm15, %v586_v49, %v598_v61 }
 0x321   :  { %v2347_v29 = vsel %vm595_vm1, %v587_v57, %v599_v30  ;;  %684 = vst [vmem:[#allocation2 + $0x20] sm:$0xff] %v2341_v62  ;;  %685 = vst [vmem:[#allocation2 + $0xc8] sm:$0xff] %v2343_v12  ;;  %750 = vrot.lane.b32.xlu1 %v2343_v12, %s1919_s0  ;;  %748 = vrot.lane.b32.xlu0 %v2341_v62, %s1919_s0 }
 0x322   :  { %686 = vst [vmem:[#allocation2 + $0x90] sm:$0xff] %v2345_v28  ;;  %687 = vst [vmem:[#allocation2 + $0xa0] sm:$0xff] %v2347_v29 }
 0x325   :  { %752 = vrot.lane.b32.xlu1 %v2345_v28, %s1919_s0  ;;  %732 = vrot.lane.b32.xlu0 %v2345_v28, %s1920_s19 }
 0x329   :  { %730 = vrot.lane.b32.xlu1 %v2343_v12, %s1920_s19  ;;  %710 = vrot.lane.b32.xlu0 %v2343_v12, %s1921_s20 }
 0x32d   :  { %728 = vrot.lane.b32.xlu1 %v2341_v62, %s1920_s19  ;;  %754 = vrot.lane.b32.xlu0 %v2347_v29, %s1919_s0 }
 0x331   :  { %712 = vrot.lane.b32.xlu1 %v2345_v28, %s1921_s20  ;;  %690 = vrot.lane.b32.xlu0 %v2343_v12, %s1922_s21 }
 0x335   :  { %708 = vrot.lane.b32.xlu1 %v2341_v62, %s1921_s20  ;;  %734 = vrot.lane.b32.xlu0 %v2347_v29, %s1920_s19 }
 0x339   :  { %692 = vrot.lane.b32.xlu1 %v2345_v28, %s1922_s21  ;;  %714 = vrot.lane.b32.xlu0 %v2347_v29, %s1921_s20 }
 0x33d   :  { %688 = vrot.lane.b32.xlu1 %v2341_v62, %s1922_s21  ;;  %666 = vrot.lane.b32.xlu0 %v2343_v12, %s1923_s22 }
 0x341   :  { %664 = vrot.lane.b32.xlu1 %v2341_v62, %s1923_s22  ;;  %670 = vrot.lane.b32.xlu0 %v2347_v29, %s1923_s22 }
 0x345   :  { %694 = vrot.lane.b32.xlu1 %v2347_v29, %s1922_s21  ;;  %646 = vrot.lane.b32.xlu0 %v2343_v12, %s1924_s23 }
 0x349   :  { %644 = vrot.lane.b32.xlu1 %v2341_v62, %s1924_s23  ;;  %624 = vrot.lane.b32.xlu0 %v2341_v62, %s1925_s24 }
 0x34d   :  { %650 = vrot.lane.b32.xlu1 %v2347_v29, %s1924_s23  ;;  %668 = vrot.lane.b32.xlu0 %v2345_v28, %s1923_s22 }
 0x351   :  { %626 = vrot.lane.b32.xlu1 %v2343_v12, %s1925_s24  ;;  %604 = vrot.lane.b32.xlu0 %v2341_v62, %s1926_s25 }
 0x355   :  { %630 = vrot.lane.b32.xlu1 %v2347_v29, %s1925_s24  ;;  %648 = vrot.lane.b32.xlu0 %v2345_v28, %s1924_s23 }
 0x359   :  { %606 = vrot.lane.b32.xlu1 %v2343_v12, %s1926_s25  ;;  %628 = vrot.lane.b32.xlu0 %v2345_v28, %s1925_s24 }
 0x35d   :  { %610 = vrot.lane.b32.xlu1 %v2347_v29, %s1926_s25 }
 0x361   :  { %608 = vrot.lane.b32.xlu1 %v2345_v28, %s1926_s25 }
 0x393   :  { %v751_v22 = vpop.permute.xlu1 %750  ;;  %v749_v52 = vpop.permute.xlu0 %748 }
 0x394   :  { %v758_v0 = vsel %vm286_vm4, %v749_v52, %v751_v22 }
 0x395   :  { %v760_v4 = vmul.f32 %v758_v0, %v2095_v24 }
 0x397   :  { %764 = vst [vmem:[#allocation2 + $0x100] sm:$0xff] %v760_v4  ;;  %v753_v7 = vpop.permute.xlu1 %752  ;;  %v733_v21 = vpop.permute.xlu0 %732 }
 0x398   :  { %v757_v26 = vsel %vm286_vm4, %v751_v22, %v753_v7 }
 0x399   :  { %v761_v32 = vmul.f32 %v757_v26, %v2099_v25 }
 0x39b   :  { %765 = vst [vmem:[#allocation2] sm:$0xff] %v761_v32  ;;  %v731_v34 = vpop.permute.xlu1 %730  ;;  %v711_v38 = vpop.permute.xlu0 %710  ;;  %822 = vmatprep.subr.mxu0 %v761_v32 }
 0x39c   :  { %v737_v40 = vsel %vm265_vm6, %v731_v34, %v733_v21  ;;  %823 = vmatpush1.msra.mxu0 %v760_v4 }
 0x39d   :  { %v741_v42 = vmul.f32 %v737_v40, %v2082_v17 }
 0x39f   :  { %745 = vst [vmem:[#allocation2 + $0xf0] sm:$0xff] %v741_v42  ;;  %v729_v24 = vpop.permute.xlu1 %728  ;;  %v755_v50 = vpop.permute.xlu0 %754  ;;  %824 = vmatprep.subr.mxu0 %v741_v42 }
 0x3a0   :  { %v738_v23 = vsel %vm265_vm6, %v729_v24, %v731_v34  ;;  %v756_v25 = vsel %vm286_vm4, %v753_v7, %v755_v50  ;;  %v759_v51 = vsel %vm286_vm4, %v755_v50, %v749_v52  ;;  %vm1010_vm4 = vcmask 64512  }
 0x3a1   :  { %v740_v49 = vmul.f32 %v738_v23, %v2079_v16  ;;  %v762_v57 = vmul.f32 %v756_v25, %v2157_v54  ;;  %v763_v59 = vmul.f32 %v759_v51, %v2161_v55 }
 0x3a3   :  { %744 = vst [vmem:[#allocation2 + $0x50] sm:$0xff] %v740_v49  ;;  %766 = vst [vmem:[#allocation2 + $0x40] sm:$0xff] %v762_v57  ;;  %v713_v17 = vpop.permute.xlu1 %712  ;;  %v691_v60 = vpop.permute.xlu0 %690  ;;  %825 = vmatpush1.msra.mxu0 %v740_v49  ;;  %893 = vmatprep.subr.mxu1 %v763_v59 }
 0x3a4   :  { %767 = vst [vmem:[#allocation2 + $0xe8] sm:$0xff] %v763_v59  ;;  %v717_v61 = vsel %vm240_vm12, %v711_v38, %v713_v17  ;;  %894 = vmatpush1.msra.mxu1 %v762_v57 }
 0x3a5   :  { %v721_v30 = vmul.f32 %v717_v61, %v2131_v43 }
 0x3a7   :  { %725 = vst [vmem:[#allocation2 + $0x88] sm:$0xff] %v721_v30  ;;  %v709_v37 = vpop.permute.xlu1 %708  ;;  %v735_v16 = vpop.permute.xlu0 %734  ;;  %826 = vmatprep.subr.mxu0 %v721_v30 }
 0x3a8   :  { %v718_v54 = vsel %vm240_vm12, %v709_v37, %v711_v38  ;;  %v736_v55 = vsel %vm265_vm6, %v733_v21, %v735_v16  ;;  %v739_v22 = vsel %vm265_vm6, %v735_v16, %v729_v24  ;;  %vm1266_vm6 = vcmask 1043456  }
 0x3a9   :  { %v720_v52 = vmul.f32 %v718_v54, %v2153_v53  ;;  %v742_v0 = vmul.f32 %v736_v55, %v2137_v45  ;;  %v743_v4 = vmul.f32 %v739_v22, %v2140_v46 }
 0x3ab   :  { %724 = vst [vmem:[#allocation2 + $0xa8] sm:$0xff] %v720_v52  ;;  %746 = vst [vmem:[#allocation2 + $0xb8] sm:$0xff] %v742_v0  ;;  %v693_v43 = vpop.permute.xlu1 %692  ;;  %v715_v7 = vpop.permute.xlu0 %714  ;;  %827 = vmatpush1.msra.mxu0 %v720_v52  ;;  %895 = vmatprep.subr.mxu1 %v743_v4 }
 0x3ac   :  { %747 = vst [vmem:[#allocation2 + $0x28] sm:$0xff] %v743_v4  ;;  %v697_v26 = vsel %vm219_vm13, %v691_v60, %v693_v43  ;;  %v716_v21 = vsel %vm240_vm12, %v713_v17, %v715_v7  ;;  %v719_v53 = vsel %vm240_vm12, %v715_v7, %v709_v37  ;;  %896 = vmatpush1.msra.mxu1 %v742_v0 }
 0x3ad   :  { %v701_v45 = vmul.f32 %v697_v26, %v2088_v19  ;;  %v722_v46 = vmul.f32 %v716_v21, %v2191_v27  ;;  %v723_v32 = vmul.f32 %v719_v53, %v2198_v33 }
 0x3af   :  { %705 = vst [vmem:[#allocation2 + $0x58] sm:$0xff] %v701_v45  ;;  %726 = vst [vmem:[#allocation2 + $0xd8] sm:$0xff] %v722_v46  ;;  %v689_v34 = vpop.permute.xlu1 %688  ;;  %v667_v38 = vpop.permute.xlu0 %666  ;;  %828 = vmatprep.subr.mxu0 %v701_v45  ;;  %897 = vmatprep.subr.mxu1 %v723_v32 }
 0x3b0   :  { %727 = vst [vmem:[#allocation2 + $0xc0] sm:$0xff] %v723_v32  ;;  %v698_v40 = vsel %vm219_vm13, %v689_v34, %v691_v60  ;;  %898 = vmatpush1.msra.mxu1 %v722_v46  ;;  %v768_v46 = vld [vmem:[%s2676_s1 + $0x10] sm:$0xff] }
 0x3b1   :  { %v700_v42 = vmul.f32 %v698_v40, %v2085_v18  ;;  %v2535_v40 = vpop.f32.mrf.mxu1 }
 0x3b3   :  { %704 = vst [vmem:[#allocation2 + $0x70] sm:$0xff] %v700_v42  ;;  %v665_v24 = vpop.permute.xlu1 %664  ;;  %v671_v19 = vpop.permute.xlu0 %670  ;;  %829 = vmatpush1.msra.mxu0 %v700_v42 }
 0x3b4   :  { %v674_v27 = vsel %vm194_vm0, %v665_v24, %v667_v38  ;;  %v675_v33 = vsel %vm194_vm0, %v671_v19, %v665_v24  ;;  %830 = vmatprep.subr.mxu0 %v2343_v12 }
 0x3b5   :  { %v677_v50 = vmul.f32 %v674_v27, %v2115_v36  ;;  %v676_v23 = vmul.f32 %v675_v33, %v2134_v44  ;;  %831 = vmatpush1.msra.mxu0 %v2341_v62 }
 0x3b7   :  { %681 = vst [vmem:[#allocation2 + $0x38] sm:$0xff] %v677_v50  ;;  %680 = vst [vmem:[#allocation2 + $0xf8] sm:$0xff] %v676_v23  ;;  %v695_v18 = vpop.permute.xlu1 %694  ;;  %v647_v25 = vpop.permute.xlu0 %646  ;;  %832 = vmatprep.subr.mxu0 %v677_v50 }
 0x3b8   :  { %v696_v51 = vsel %vm219_vm13, %v693_v43, %v695_v18  ;;  %v699_v49 = vsel %vm219_vm13, %v695_v18, %v689_v34  ;;  %833 = vmatpush1.msra.mxu0 %v676_v23  ;;  %vm1932_vm13 = vmmov 0  }
 0x3b9   :  { %v702_v12 = vmul.f32 %v696_v51, %v2143_v47  ;;  %v703_v36 = vmul.f32 %v699_v49, %v2146_v48 }
 0x3bb   :  { %706 = vst [vmem:[#allocation2 + $0xe0] sm:$0xff] %v702_v12  ;;  %707 = vst [vmem:[#allocation2 + $0x60] sm:$0xff] %v703_v36  ;;  %v645_v44 = vpop.permute.xlu1 %644  ;;  %v625_v62 = vpop.permute.xlu0 %624  ;;  %899 = vmatprep.subr.mxu1 %v703_v36 }
 0x3bc   :  { %v654_v57 = vsel %vm169_vm3, %v645_v44, %v647_v25  ;;  %900 = vmatpush1.msra.mxu1 %v702_v12 }
 0x3bd   :  { %v657_v59 = vmul.f32 %v654_v57, %v2237_v14  ;;  %901 = vmatprep.subr.mxu1 %v2347_v29 }
 0x3be   :  { %902 = vmatpush1.msra.mxu1 %v2345_v28 }
 0x3bf   :  { %661 = vst [vmem:[#allocation2 + $0x110] sm:$0xff] %v657_v59  ;;  %v651_v17 = vpop.permute.xlu1 %650  ;;  %v669_v47 = vpop.permute.xlu0 %668  ;;  %834 = vmatprep.subr.mxu0 %v657_v59 }
 0x3c0   :  { %v655_v48 = vsel %vm169_vm3, %v651_v17, %v645_v44  ;;  %v672_v60 = vsel %vm194_vm0, %v669_v47, %v671_v19  ;;  %v673_v61 = vsel %vm194_vm0, %v667_v38, %v669_v47  ;;  %v1929_v44 = vmov 10  }
 0x3c1   :  { %v656_v30 = vmul.f32 %v655_v48, %v2233_v10  ;;  %v678_v14 = vmul.f32 %v673_v61, %v2177_v11  ;;  %v679_v29 = vmul.f32 %v672_v60, %v2180_v15  ;;  %1866 = vset.pattern.permute.xlu1 %v1929_v44  ;;  %v1930_v61 = vmov 11  }
 0x3c2   :  { %1867 = vset.pattern.permute.xlu0 %v1930_v61 }
 0x3c3   :  { %660 = vst [vmem:[#allocation2 + $0x80] sm:$0xff] %v656_v30  ;;  %682 = vst [vmem:[#allocation2 + $0x8] sm:$0xff] %v678_v14  ;;  %v627_v28 = vpop.permute.xlu1 %626  ;;  %v605_v37 = vpop.permute.xlu0 %604  ;;  %903 = vmatprep.subr.mxu1 %v679_v29  ;;  %835 = vmatpush1.msra.mxu0 %v656_v30 }
 0x3c4   :  { %683 = vst [vmem:[#allocation2 + $0x78] sm:$0xff] %v679_v29  ;;  %v634_v16 = vsel %vm148_vm5, %v625_v62, %v627_v28  ;;  %904 = vmatpush1.msra.mxu1 %v678_v14 }
 0x3c5   :  { %v637_v54 = vmul.f32 %v634_v16, %v2225_v3  ;;  %v68_v16 = vld [vmem:[%s2678_s2] sm:$0xff] }
 0x3c7   :  { %641 = vst [vmem:[#allocation2 + $0x68] sm:$0xff] %v637_v54  ;;  %v631_v55 = vpop.permute.xlu1 %630  ;;  %v649_v10 = vpop.permute.xlu0 %648  ;;  %836 = vmatprep.subr.mxu0 %v637_v54 }
 0x3c8   :  { %v635_v11 = vsel %vm148_vm5, %v631_v55, %v625_v62  ;;  %v652_v15 = vsel %vm169_vm3, %v649_v10, %v651_v17  ;;  %v653_v22 = vsel %vm169_vm3, %v647_v25, %v649_v10 }
 0x3c9   :  { %v636_v52 = vmul.f32 %v635_v11, %v2222_v1  ;;  %v658_v0 = vmul.f32 %v653_v22, %v2287_v9  ;;  %v659_v4 = vmul.f32 %v652_v15, %v2291_v20 }
 0x3cb   :  { %640 = vst [vmem:[#allocation2 + $0x108] sm:$0xff] %v636_v52  ;;  %662 = vst [vmem:[#allocation2 + $0x118] sm:$0xff] %v658_v0  ;;  %v607_v3 = vpop.permute.xlu1 %606  ;;  %v629_v43 = vpop.permute.xlu0 %628  ;;  %837 = vmatpush1.msra.mxu0 %v636_v52  ;;  %905 = vmatprep.subr.mxu1 %v659_v4 }
 0x3cc   :  { %663 = vst [vmem:[#allocation2 + $0x98] sm:$0xff] %v659_v4  ;;  %v614_v7 = vsel %vm123_vm9, %v605_v37, %v607_v3  ;;  %v632_v26 = vsel %vm148_vm5, %v629_v43, %v631_v55  ;;  %v633_v1 = vsel %vm148_vm5, %v627_v28, %v629_v43  ;;  %906 = vmatpush1.msra.mxu1 %v658_v0 }
 0x3cd   :  { %v617_v9 = vmul.f32 %v614_v7, %v2270_v31  ;;  %v638_v20 = vmul.f32 %v633_v1, %v2273_v63  ;;  %v639_v21 = vmul.f32 %v632_v26, %v2276_v13 }
 0x3cf   :  { %621 = vst [vmem:[#allocation2 + $0xd0] sm:$0xff] %v617_v9  ;;  %642 = vst [vmem:[#allocation2 + $0x30] sm:$0xff] %v638_v20  ;;  %v611_v53 = vpop.permute.xlu1 %610  ;;  %838 = vmatprep.subr.mxu0 %v617_v9  ;;  %907 = vmatprep.subr.mxu1 %v639_v21 }
 0x3d0   :  { %643 = vst [vmem:[#allocation2 + $0x18] sm:$0xff] %v639_v21  ;;  %v615_v45 = vsel %vm123_vm9, %v611_v53, %v605_v37  ;;  %908 = vmatpush1.msra.mxu1 %v638_v20 }
 0x3d1   :  { %v616_v31 = vmul.f32 %v615_v45, %v2283_v8  ;;  %v2531_v8 = vpop.f32.mrf.mxu0 }
 0x3d3   :  { %620 = vst [vmem:[#allocation2 + $0xb0] sm:$0xff] %v616_v31  ;;  %v609_v63 = vpop.permute.xlu1 %608  ;;  %839 = vmatpush1.msra.mxu0 %v616_v31  ;;  %v2533_v6 = vpop.f32.mrf.mxu0 }
 0x3d4   :  { %v612_v13 = vsel %vm123_vm9, %v609_v63, %v611_v53  ;;  %v613_v32 = vsel %vm123_vm9, %v607_v3, %v609_v63  ;;  %1823 = vmatmul.mubr.msk.f32.vlgmr.msra.gmra.mxu0 %vm341_vm10, %v768_v46  ;;  %v70_v3 = vld [vmem:[%s2678_s2 + $0x10] sm:$0xff] }
 0x3d5   :  { %v618_v34 = vmul.f32 %v613_v32, %v2302_v35  ;;  %v619_v38 = vmul.f32 %v612_v13, %v2309_v41  ;;  %1081 = vmatprep.mubr.f32.mxu0 %v1918_v2  ;;  %v2537_v41 = vpop.f32.mrf.mxu1 }
 0x3d7   :  { %622 = vst [vmem:[#allocation2 + $0x10] sm:$0xff] %v618_v34  ;;  %623 = vst [vmem:[#allocation2 + $0x48] sm:$0xff] %v619_v38  ;;  %909 = vmatprep.subr.mxu1 %v619_v38 }
 0x3d8   :  { %910 = vmatpush1.msra.mxu1 %v618_v34 }
 0x3d9   :  { %1824 = vmatmul.mubr.msk.f32.vlgmr.msra.gmra.mxu1 %vm341_vm10, %v768_v46 }
 0x3da   :  { %1164 = vmatprep.mubr.f32.mxu1 %v1918_v2 }
 0x494   :  { %v874_v42 = vpop.f32.mrf.mxu0 }
 0x495   :  { %v956_v35 = vmul.f32 %v874_v42, %v874_v42 }
 0x496   :  { %v876_v24 = vpop.f32.mrf.mxu0 }
 0x497   :  { %v950_v19 = vadd.f32 %v876_v24, %v874_v42  ;;  %v957_v27 = vmul.f32 %v876_v24, %v876_v24 }
 0x499   :  { %v945_v33 = vpop.f32.mrf.mxu1  ;;  %v960_v50 = vadd.f32 %v957_v27, %v956_v35 }
 0x49a   :  { %v958_v23 = vmul.f32 %v945_v33, %v945_v33  ;;  %v951_v18 = vadd.f32 %v950_v19, %v945_v33 }
 0x49b   :  { %v947_v25 = vpop.f32.mrf.mxu1 }
 0x49c   :  { %v952_v51 = vadd.f32 %v951_v18, %v947_v25  ;;  %v959_v49 = vmul.f32 %v947_v25, %v947_v25  ;;  %v961_v12 = vadd.f32 %v960_v50, %v958_v23 }
 0x49e   :  { %953 = vadd.xlane.f32.xlu0 %v952_v51  ;;  %v962_v36 = vadd.f32 %v961_v12, %v959_v49  ;;  %v518_v49 = vmul.f32 %v2531_v8, %v2531_v8  ;;  %v519_v12 = vmul.f32 %v2533_v6, %v2533_v6 }
 0x4a0   :  { %963 = vadd.xlane.f32.xlu1 %v962_v36  ;;  %v520_v36 = vmul.f32 %v2535_v40, %v2535_v40  ;;  %v527_v44 = vadd.f32 %v519_v12, %v518_v49 }
 0x527   :  { %v954_v62 = vpop.xlane.xlu0 %953 }
 0x528   :  { %v955_v57 = vmul.f32 0.001953125, %v954_v62  ;;  %v507_v62 = vadd.f32 %v2533_v6, %v2531_v8 }
 0x529   :  { %v964_v59 = vpop.xlane.xlu1 %963 }
 0x52a   :  { %v966_v17 = vmul.f32 %v955_v57, %v955_v57  ;;  %v965_v47 = vmul.f32 0.001953125, %v964_v59  ;;  %v528_v59 = vadd.f32 %v527_v44, %v520_v36 }
 0x52c   :  { %v967_v48 = vsub.f32 %v965_v47, %v966_v17  ;;  %v508_v17 = vadd.f32 %v507_v62, %v2535_v40 }
 0x52e   :  { %v968_v60 = vadd.f32 1e-05, %v967_v48  ;;  %v509_v48 = vadd.f32 %v508_v17, %v2537_v41 }
 0x530   :  { %1877 = vrsqrt.f32 %v968_v60  ;;  %v1931_v60 = vmov 12  }
 0x53d   :  { %v1878_v30 = vpop.eup %1877 }
 0x53e   :  { %v970_v14 = vmul.f32 %v1878_v30, %v2336_v56 }
 0x540   :  { %973 = vperm.xlu1 %1866, %v970_v14   ;;  %v980_v29 = vmul.f32 %v970_v14, %v955_v57  ;;  %v521_v57 = vmul.f32 %v2537_v41, %v2537_v41 }
 0x542   :  { %982 = vrot.lane.b32.xlu0 %v980_v29, %s1923_s22  ;;  %v529_v47 = vadd.f32 %v528_v59, %v521_v57 }
 0x544   :  { %1868 = vset.pattern.permute.xlu1 %v1927_v58 }
 0x545   :  { %997 = vperm.xlu1 %1868, %v68_v16  }
 0x5b4   :  { %v983_v28 = vpop.permute.xlu0 %982 }
 0x5b5   :  { %v985_v37 = vsub.f32 %v2336_v56, %v983_v28 }
 0x5b7   :  { %988 = vperm.xlu0 %1867, %v985_v37  }
 0x5bb   :  { %1869 = vset.pattern.permute.xlu0 %v1927_v58  ;;  %v974_v54 = vpop.permute.xlu1 %973  ;;  %v69_v58 = vld [vmem:[%s2678_s2 + $0x8] sm:$0xff] }
 0x5bc   :  { %v976_v55 = vmul.f32 %v974_v54, %v874_v42  ;;  %v977_v10 = vmul.f32 %v974_v54, %v876_v24  ;;  %v978_v11 = vmul.f32 %v974_v54, %v945_v33  ;;  %v979_v15 = vmul.f32 %v974_v54, %v947_v25 }
 0x5c0   :  { %v998_v43 = vpop.permute.xlu1 %997 }
 0x632   :  { %v989_v22 = vpop.permute.xlu0 %988 }
 0x633   :  { %v2547_v52 = vadd.f32 %v989_v22, %v976_v55  ;;  %v2549_v0 = vadd.f32 %v989_v22, %v978_v11  ;;  %v2551_v4 = vadd.f32 %v989_v22, %v977_v10  ;;  %v2553_v56 = vadd.f32 %v989_v22, %v979_v15 }
 0x635   :  { %1047 = vmatprep.subr.mxu0 %v2551_v4  ;;  %1130 = vmatprep.subr.mxu1 %v2553_v56 }
 0x636   :  { %1048 = vmatpush1.msra.mxu0 %v2547_v52  ;;  %1131 = vmatpush1.msra.mxu1 %v2549_v0 }
 0x637   :  { %1825 = vmatmul.mubr.msk.f32.vlgmr.msra.gmra.mxu0 %vm1010_vm4, %v68_v16  ;;  %1828 = vmatmul.mubr.msk.f32.vlgmr.msra.gmra.mxu1 %vm1010_vm4, %v68_v16 }
 0x638   :  { %1087 = vmatprep.mubr.f32.mxu0 %v1918_v2  ;;  %1170 = vmatprep.mubr.f32.mxu1 %v1918_v2 }
 0x639   :  { %1839 = vmatprep.subr.mxu1 %v1918_v2 }
 0x63b   :  { %1826 = vmatmul.mubr.msk.f32.gmra.mxu0 %vm1010_vm4, %v69_v58  ;;  %1829 = vmatmul.mubr.msk.f32.gmra.mxu1 %vm1010_vm4, %v69_v58 }
 0x63c   :  { %1093 = vmatprep.mubr.f32.mxu0 %v1918_v2  ;;  %1176 = vmatprep.mubr.f32.mxu1 %v1918_v2 }
 0x63f   :  { %1827 = vmatmul.mubr.msk.f32.gmra.mxu0 %vm1010_vm4, %v70_v3  ;;  %1830 = vmatmul.mubr.msk.f32.gmra.mxu1 %vm1010_vm4, %v70_v3 }
 0x640   :  { %1841 = vmatprep.mubr.msk.f32.mxu1 %vm1932_vm13, %v1918_v2 }
 0x6f7   :  { %v1083_v7 = vpop.f32.mrf.mxu0  ;;  %v1166_v26 = vpop.f32.mrf.mxu1 }
 0x6f8   :  { %v1084_v20 = vadd.f32 %v1083_v7, %v998_v43  ;;  %v1167_v21 = vadd.f32 %v1166_v26, %v998_v43 }
 0x6f9   :  { %v1085_v1 = vpop.f32.mrf.mxu0  ;;  %v1168_v9 = vpop.f32.mrf.mxu1 }
 0x6fa   :  { %v1086_v53 = vadd.f32 %v1085_v1, %v998_v43  ;;  %v1169_v45 = vadd.f32 %v1168_v9, %v998_v43 }
 0x6fb   :  { %v1089_v61 = vpop.f32.mrf.mxu0  ;;  %v1172_v14 = vpop.f32.mrf.mxu1 }
 0x6fc   :  { %v1183_v46 = vmax.f32 %v1084_v20, %v1086_v53  ;;  %v1184_v31 = vmax.f32 %v1167_v21, %v1169_v45 }
 0x6fd   :  { %v1091_v29 = vpop.f32.mrf.mxu0  ;;  %v1174_v16 = vpop.f32.mrf.mxu1 }
 0x6fe   :  { %v1185_v63 = vmax.f32 %v1183_v46, %v1184_v31 }
 0x6ff   :  { %v1095_v37 = vpop.f32.mrf.mxu0 }
 0x700   :  { %1186 = vmax.xlane.f32.xlu1 %v1185_v63 }
 0x701   :  { %v1097_v22 = vpop.f32.mrf.mxu0 }
 0x789   :  { %v1187_v13 = vpop.xlane.xlu1 %1186 }
 0x78a   :  { %v1188_v32 = vsub.f32 %v1084_v20, %v1187_v13  ;;  %v1189_v34 = vsub.f32 %v1086_v53, %v1187_v13  ;;  %v1190_v38 = vsub.f32 %v1167_v21, %v1187_v13  ;;  %v1191_v42 = vsub.f32 %v1169_v45, %v1187_v13 }
 0x78c   :  { %v1192_v35 = vmul.f32 1.442695, %v1188_v32  ;;  %v1194_v24 = vmul.f32 1.442695, %v1189_v34  ;;  %v1196_v19 = vmul.f32 1.442695, %v1190_v38 }
 0x78d   :  { %v1198_v27 = vmul.f32 1.442695, %v1191_v42 }
 0x78e   :  { %1879 = vpow2.f32 %v1192_v35 }
 0x78f   :  { %1881 = vpow2.f32 %v1194_v24 }
 0x790   :  { %1883 = vpow2.f32 %v1196_v19 }
 0x791   :  { %1885 = vpow2.f32 %v1198_v27 }
 0x79b   :  { %v1880_v33 = vpop.eup %1879 }
 0x79c   :  { %v1882_v50 = vpop.eup %1881 }
 0x79d   :  { %v2576_v23 = vpop.eup %1883  ;;  %v1200_v18 = vadd.f32 %v1882_v50, %v1880_v33 }
 0x79e   :  { %v2578_v25 = vpop.eup %1885 }
 0x79f   :  { %v1204_v51 = vadd.f32 %v2578_v25, %v2576_v23  ;;  %1201 = vadd.xlane.f32.xlu0 %v1200_v18 }
 0x7a1   :  { %1205 = vadd.xlane.f32.xlu1 %v1204_v51 }
 0x7b2   :  { %1002 = vperm.xlu1 %1868, %v69_v58  }
 0x7b5   :  { %1007 = vperm.xlu0 %1869, %v70_v3  }
 0x7b6   :  { %1870 = vset.pattern.permute.xlu1 %v1931_v60 }
 0x7d4   :  { %530 = vadd.xlane.f32.xlu0 %v529_v47 }
 0x7d6   :  { %510 = vadd.xlane.f32.xlu1 %v509_v48 }
 0x828   :  { %v1202_v30 = vpop.xlane.xlu0 %1201 }
 0x829   :  { %1887 = vrcp.f32 %v1202_v30 }
 0x82a   :  { %v2595_v28 = vpop.xlane.xlu1 %1205 }
 0x82e   :  { %v1003_v54 = vpop.permute.xlu1 %1002 }
 0x82f   :  { %v1090_v55 = vadd.f32 %v1089_v61, %v1003_v54  ;;  %v1092_v10 = vadd.f32 %v1091_v29, %v1003_v54  ;;  %v1173_v11 = vadd.f32 %v1172_v14, %v1003_v54  ;;  %v1175_v15 = vadd.f32 %v1174_v16, %v1003_v54 }
 0x830   :  { %v2597_v58 = vpop.permute.xlu0 %1007 }
 0x831   :  { %v1228_v3 = vrot.slane %v1090_v55, 4  ;;  %v1234_v43 = vrot.slane %v1092_v10, 4  ;;  %v1240_v7 = vrot.slane %v1173_v11, 4  ;;  %v1246_v26 = vrot.slane %v1175_v15, 4 }
 0x832   :  { %v1098_v1 = vadd.f32 %v1097_v22, %v2597_v58  ;;  %v1096_v62 = vadd.f32 %v1095_v37, %v2597_v58 }
 0x833   :  { %v1229_v9 = vmax.f32 %v1090_v55, %v1228_v3  ;;  %v1235_v20 = vmax.f32 %v1092_v10, %v1234_v43  ;;  %v1241_v21 = vmax.f32 %v1173_v11, %v1240_v7  ;;  %v1247_v53 = vmax.f32 %v1175_v15, %v1246_v26 }
 0x834   :  { %1418 = vmatprep.mubr.f32.mxu0 %v1098_v1 }
 0x835   :  { %v1230_v45 = vrot.slane %v1229_v9, 2  ;;  %v1236_v46 = vrot.slane %v1235_v20, 2  ;;  %v1242_v31 = vrot.slane %v1241_v21, 2  ;;  %v1248_v63 = vrot.slane %v1247_v53, 2 }
 0x836   :  { %v1888_v13 = vpop.eup %1887 }
 0x837   :  { %v1231_v32 = vmax.f32 %v1229_v9, %v1230_v45  ;;  %v1237_v34 = vmax.f32 %v1235_v20, %v1236_v46  ;;  %v1243_v38 = vmax.f32 %v1241_v21, %v1242_v31  ;;  %v1249_v42 = vmax.f32 %v1247_v53, %v1248_v63 }
 0x838   :  { %v1225_v35 = vmul.f32 %v1888_v13, %v1882_v50  ;;  %v1224_v24 = vmul.f32 %v1888_v13, %v1880_v33 }
 0x839   :  { %v1232_v19 = vrot.slane %v1231_v32, 1  ;;  %v1238_v27 = vrot.slane %v1237_v34, 1  ;;  %v1244_v18 = vrot.slane %v1243_v38, 1  ;;  %v1250_v51 = vrot.slane %v1249_v42, 1 }
 0x83a   :  { %1384 = vmatprep.subr.mxu0 %v1225_v35 }
 0x83b   :  { %v1233_v49 = vmax.f32 %v1231_v32, %v1232_v19  ;;  %v1239_v12 = vmax.f32 %v1237_v34, %v1238_v27  ;;  %v1245_v36 = vmax.f32 %v1243_v38, %v1244_v18  ;;  %v1251_v44 = vmax.f32 %v1249_v42, %v1250_v51  ;;  %1385 = vmatpush1.xpose.msra.mxu0 %v1224_v24 }
 0x83d   :  { %v1252_v57 = vsub.f32 %v1090_v55, %v1233_v49  ;;  %v1253_v59 = vsub.f32 %v1092_v10, %v1239_v12  ;;  %v1254_v17 = vsub.f32 %v1173_v11, %v1245_v36  ;;  %v1255_v47 = vsub.f32 %v1175_v15, %v1251_v44 }
 0x83e   :  { %1419 = vmatmul.mubr.f32.vlgmr.msra.gmra.mxu0 %v1096_v62 }
 0x83f   :  { %v1256_v48 = vmul.f32 1.442695, %v1252_v57  ;;  %v1258_v50 = vmul.f32 1.442695, %v1253_v59  ;;  %v1260_v33 = vmul.f32 1.442695, %v1254_v17  ;;  %1569 = vmatprep.mubr.f32.mxu0 %v1918_v2 }
 0x840   :  { %v1262_v61 = vmul.f32 1.442695, %v1255_v47 }
 0x841   :  { %1889 = vpow2.f32 %v1256_v48 }
 0x842   :  { %1891 = vpow2.f32 %v1258_v50 }
 0x843   :  { %1893 = vpow2.f32 %v1260_v33 }
 0x844   :  { %1895 = vpow2.f32 %v1262_v61 }
 0x84e   :  { %v2602_v30 = vpop.eup %1889 }
 0x84f   :  { %v2604_v14 = vpop.eup %1891  ;;  %v1267_v29 = vsel %vm1266_vm6, %v2602_v30, 0.0  ;;  %v1303_v37 = vrot.slane %v2602_v30, 4 }
 0x850   :  { %v2609_v16 = vpop.eup %1893  ;;  %v1268_v54 = vrot.slane %v1267_v29, 4  ;;  %v1304_v55 = vrot.slane %v2604_v14, 4  ;;  %v1274_v10 = vsel %vm1266_vm6, %v2604_v14, 0.0 }
 0x851   :  { %v2614_v11 = vpop.eup %1895  ;;  %v1281_v15 = vsel %vm1266_vm6, %v2609_v16, 0.0  ;;  %v1305_v22 = vrot.slane %v2609_v16, 4  ;;  %v1311_v3 = vsel %vm1266_vm6, %v1303_v37, 0.0  ;;  %v1275_v43 = vrot.slane %v1274_v10, 4 }
 0x852   :  { %v1269_v7 = vadd.f32 %v1268_v54, %v1267_v29  ;;  %v1282_v26 = vrot.slane %v1281_v15, 4  ;;  %v1306_v1 = vrot.slane %v2614_v11, 4  ;;  %v1312_v9 = vrot.slane %v1311_v3, 4 }
 0x853   :  { %v1325_v20 = vsel %vm1266_vm6, %v1305_v22, 0.0  ;;  %v1276_v21 = vadd.f32 %v1275_v43, %v1274_v10  ;;  %v1318_v53 = vsel %vm1266_vm6, %v1304_v55, 0.0  ;;  %v1288_v45 = vsel %vm1266_vm6, %v2614_v11, 0.0 }
 0x854   :  { %v1283_v46 = vadd.f32 %v1282_v26, %v1281_v15  ;;  %v1326_v31 = vrot.slane %v1325_v20, 4  ;;  %v1319_v63 = vrot.slane %v1318_v53, 4  ;;  %v1270_v13 = vrot.slane %v1269_v7, 2 }
 0x855   :  { %v1277_v32 = vrot.slane %v1276_v21, 2  ;;  %v1313_v34 = vadd.f32 %v1312_v9, %v1311_v3  ;;  %v1289_v38 = vrot.slane %v1288_v45, 4  ;;  %v1332_v42 = vsel %vm1266_vm6, %v1306_v1, 0.0 }
 0x856   :  { %v1320_v35 = vadd.f32 %v1319_v63, %v1318_v53  ;;  %v1271_v24 = vadd.f32 %v1270_v13, %v1269_v7  ;;  %v1333_v19 = vrot.slane %v1332_v42, 4  ;;  %v1284_v27 = vrot.slane %v1283_v46, 2 }
 0x857   :  { %v1278_v18 = vadd.f32 %v1277_v32, %v1276_v21  ;;  %v1314_v51 = vrot.slane %v1313_v34, 2  ;;  %v1290_v49 = vadd.f32 %v1289_v38, %v1288_v45  ;;  %v1327_v12 = vadd.f32 %v1326_v31, %v1325_v20 }
 0x858   :  { %v1321_v36 = vrot.slane %v1320_v35, 2  ;;  %v1272_v44 = vrot.slane %v1271_v24, 1  ;;  %v1334_v62 = vadd.f32 %v1333_v19, %v1332_v42  ;;  %v1285_v57 = vadd.f32 %v1284_v27, %v1283_v46 }
 0x859   :  { %v1279_v59 = vrot.slane %v1278_v18, 1  ;;  %v1315_v17 = vadd.f32 %v1314_v51, %v1313_v34  ;;  %v1291_v47 = vrot.slane %v1290_v49, 2  ;;  %v1328_v48 = vrot.slane %v1327_v12, 2 }
 0x85a   :  { %v1322_v50 = vadd.f32 %v1321_v36, %v1320_v35  ;;  %v1273_v33 = vadd.f32 %v1272_v44, %v1271_v24  ;;  %v1335_v61 = vrot.slane %v1334_v62, 2  ;;  %v1286_v29 = vrot.slane %v1285_v57, 1 }
 0x85b   :  { %v1280_v37 = vadd.f32 %v1279_v59, %v1278_v18  ;;  %v1316_v54 = vrot.slane %v1315_v17, 1  ;;  %v1292_v55 = vadd.f32 %v1291_v47, %v1290_v49  ;;  %v1329_v10 = vadd.f32 %v1328_v48, %v1327_v12  ;;  %v67_v47 = vld [vmem:[%s2677_s3 + $0x8] sm:$0xff] }
 0x85c   :  { %v1323_v15 = vrot.slane %v1322_v50, 1  ;;  %1897 = vrcp.f32 %v1273_v33  ;;  %v1336_v22 = vadd.f32 %v1335_v61, %v1334_v62  ;;  %v1287_v3 = vadd.f32 %v1286_v29, %v1285_v57  ;;  %v1178_v33 = vpop.f32.mrf.mxu1 }
 0x85d   :  { %1899 = vrcp.f32 %v1280_v37  ;;  %v1317_v43 = vadd.f32 %v1316_v54, %v1315_v17  ;;  %v1293_v7 = vrot.slane %v1292_v55, 1  ;;  %v1330_v26 = vrot.slane %v1329_v10, 1  ;;  %v531_v20 = vpop.xlane.xlu0 %530 }
 0x85e   :  { %v1324_v1 = vadd.f32 %v1323_v15, %v1322_v50  ;;  %v1337_v9 = vrot.slane %v1336_v22, 1  ;;  %1901 = vrcp.f32 %v1287_v3  ;;  %v533_v63 = vmul.f32 0.001953125, %v531_v20  ;;  %v1180_v29 = vpop.f32.mrf.mxu1 }
 0x85f   :  { %v511_v21 = vpop.xlane.xlu1 %510  ;;  %1903 = vrcp.f32 %v1317_v43  ;;  %v1294_v53 = vadd.f32 %v1293_v7, %v1292_v55  ;;  %v1331_v45 = vadd.f32 %v1330_v26, %v1329_v10  ;;  %v1265_v38 = vshrl.u32 %v17_v5, 7 }
 0x860   :  { %v513_v46 = vmul.f32 0.001953125, %v511_v21  ;;  %1905 = vrcp.f32 %v1324_v1  ;;  %v1338_v31 = vadd.f32 %v1337_v9, %v1336_v22  ;;  %v1181_v10 = vadd.f32 %v1180_v29, %v2597_v58 }
 0x861   :  { %1907 = vrcp.f32 %v1294_v53  ;;  %vm1343_vm12 = vcmp.ge.s32.totalorder %v1265_v38, 4 }
 0x862   :  { %v535_v13 = vmul.f32 %v513_v46, %v513_v46  ;;  %1909 = vrcp.f32 %v1338_v31 }
 0x863   :  { %1911 = vrcp.f32 %v1331_v45 }
 0x864   :  { %v537_v32 = vsub.f32 %v533_v63, %v535_v13 }
 0x866   :  { %v539_v34 = vadd.f32 1e-05, %v537_v32 }
 0x868   :  { %1913 = vrsqrt.f32 %v539_v34 }
 0x869   :  { %v1898_v42 = vpop.eup %1897  ;;  %1915 = vrcp.f32 %v2595_v28  ;;  %v1179_v28 = vadd.f32 %v1178_v33, %v2597_v58 }
 0x86a   :  { %v1900_v35 = vpop.eup %1899 }
 0x86b   :  { %v1902_v24 = vpop.eup %1901 }
 0x86c   :  { %v1904_v19 = vpop.eup %1903 }
 0x86d   :  { %v1906_v27 = vpop.eup %1905  ;;  %v1346_v18 = vsel %vm1343_vm12, %v1904_v19, %v1898_v42 }
 0x86e   :  { %v1908_v51 = vpop.eup %1907  ;;  %v1347_v49 = vsel %vm1343_vm12, %v1906_v27, %v1900_v35  ;;  %v1350_v12 = vmul.f32 %v2602_v30, %v1346_v18 }
 0x86f   :  { %v1910_v36 = vpop.eup %1909  ;;  %v1351_v44 = vmul.f32 %v2604_v14, %v1347_v49  ;;  %v1917_v14 = vld [vmem:[%s2677_s3] sm:$0xff] }
 0x870   :  { %v1912_v62 = vpop.eup %1911  ;;  %v1349_v57 = vsel %vm1343_vm12, %v1910_v36, %v1908_v51 }
 0x871   :  { %1535 = vmatprep.subr.mxu0 %v1351_v44  ;;  %v1353_v5 = vmul.f32 %v2614_v11, %v1349_v57  ;;  %v1348_v59 = vsel %vm1343_vm12, %v1912_v62, %v1902_v24 }
 0x872   :  { %1536 = vmatpush1.msra.mxu0 %v1350_v12  ;;  %v1352_v17 = vmul.f32 %v2609_v16, %v1348_v59 }
 0x873   :  { %1844 = vmatprep.subr.mxu0 %v1918_v2 }
 0x875   :  { %v1914_v48 = vpop.eup %1913 }
 0x876   :  { %v543_v30 = vmul.f32 %v1914_v48, %v67_v47  ;;  %v1916_v61 = vpop.eup %1915 }
 0x877   :  { %v1227_v55 = vmul.f32 %v1916_v61, %v2578_v25 }
 0x878   :  { %v563_v50 = vmul.f32 %v543_v30, %v513_v46  ;;  %551 = vperm.xlu0 %1869, %v543_v30  }
 0x87a   :  { %568 = vrot.lane.b32.xlu1 %v563_v50, %s1923_s22 }
 0x87c   :  { %1872 = vset.pattern.permute.xlu0 %v1931_v60 }
 0x87e   :  { %1499 = vperm.xlu1 %1870, %v1917_v14  }
 0x882   :  { %1871 = vset.pattern.permute.xlu1 %v1928_v39  ;;  %v1226_v39 = vmul.f32 %v1916_v61, %v2576_v23 }
 0x8ec   :  { %v569_v16 = vpop.permute.xlu1 %568 }
 0x8ed   :  { %v573_v11 = vsub.f32 %v67_v47, %v569_v16 }
 0x8ef   :  { %581 = vperm.xlu1 %1871, %v573_v11  }
 0x8f3   :  { %v552_v22 = vpop.permute.xlu0 %551 }
 0x8f4   :  { %v560_v25 = vmul.f32 %v552_v22, %v2535_v40  ;;  %v561_v3 = vmul.f32 %v552_v22, %v2537_v41  ;;  %v558_v40 = vmul.f32 %v552_v22, %v2531_v8  ;;  %v559_v45 = vmul.f32 %v552_v22, %v2533_v6 }
 0x8f9   :  { %v1500_v15 = vpop.permute.xlu1 %1499 }
 0x8fe   :  { %v1420_v60 = vpop.f32.mrf.mxu0 }
 0x8ff   :  { %v1424_v37 = vmul.f32 %v1420_v60, %v67_v47 }
 0x900   :  { %v1422_v54 = vpop.f32.mrf.mxu0 }
 0x901   :  { %1840 = vmatpush3.msra.mxu1 %v1424_v37 }
 0x902   :  { %1842 = vmatmul.mubr.msk.f32.vlgmr.msra.gmra.mxu1 %vm1010_vm4, %v1917_v14  ;;  %1618 = vmatprep.subr.mxu1 %v1227_v55 }
 0x903   :  { %1619 = vmatpush1.xpose.msra.mxu1 %v1226_v39  ;;  %1652 = vmatprep.mubr.f32.mxu1 %v1181_v10 }
 0x904   :  { %1762 = vmatprep.subr.mxu1 %v1353_v5 }
 0x906   :  { %1653 = vmatmul.mubr.f32.vlgmr.msra.gmra.mxu1 %v1179_v28 }
 0x907   :  { %1763 = vmatpush1.msra.mxu1 %v1352_v17  ;;  %1796 = vmatprep.mubr.f32.mxu1 %v1918_v2 }
 0x96a   :  { %v582_v43 = vpop.permute.xlu1 %581 }
 0x96b   :  { %v590_v23 = vadd.f32 %v582_v43, %v560_v25  ;;  %v591_v7 = vadd.f32 %v582_v43, %v561_v3  ;;  %v588_v46 = vadd.f32 %v582_v43, %v558_v40  ;;  %v589_v13 = vadd.f32 %v582_v43, %v559_v45 }
 0x9c2   :  { %v1494_v26 = vpop.f32.mrf.mxu1 }
 0x9c3   :  { %1832 = vmatmul.mubr.msk.f32.vlgmr.msra.gmra.mxu0 %vm1010_vm4, %v1494_v26 }
 0x9c4   :  { %v1843_v1 = vpop.f32.mrf.mxu1  ;;  %1846 = vmatprep.mubr.msk.f32.mxu0 %vm1932_vm13, %v1918_v2 }
 0x9c6   :  { %v1654_v58 = vpop.f32.mrf.mxu1 }
 0x9c7   :  { %v1658_v9 = vmul.f32 %v1654_v58, %v67_v47 }
 0x9c8   :  { %v1656_v20 = vpop.f32.mrf.mxu1 }
 0x9c9   :  { %1845 = vmatpush3.msra.mxu0 %v1658_v9 }
 0x9ca   :  { %1847 = vmatmul.mubr.msk.f32.vlgmr.msra.gmra.mxu0 %vm1010_vm4, %v1917_v14 }
 0xa83   :  { %v1571_v21 = vpop.f32.mrf.mxu0 }
 0xa84   :  { %v1572_v41 = vadd.f32 %v1571_v21, %v1500_v15 }
 0xa85   :  { %v1573_v53 = vpop.f32.mrf.mxu0 }
 0xa86   :  { %v1576_v31 = vadd.f32 %v1572_v41, %v2547_v52  ;;  %v1574_v63 = vadd.f32 %v1573_v53, %v1500_v15 }
 0xa88   :  { %v1578_v32 = vadd.f32 %v1576_v31, %v588_v46  ;;  %v1577_v2 = vadd.f32 %v1574_v63, %v2551_v4 }
 0xa8a   :  { %vm1580_vm0 = vcmp.ge.f32.partialorder %v1578_v32, 0.0  ;;  %v1582_v34 = vmul.f32 0.2, %v1578_v32  ;;  %v1579_v38 = vadd.f32 %v1577_v2, %v589_v13  ;;  %v1725_v42 = vpop.f32.mrf.mxu0 }
 0xa8b   :  { %1834 = vmatmul.mubr.msk.f32.vlgmr.msra.gmra.mxu1 %vm1010_vm4, %v1725_v42 }
 0xa8c   :  { %v1584_v35 = vsel %vm1580_vm0, %v1578_v32, %v1582_v34  ;;  %vm1581_vm2 = vcmp.ge.f32.partialorder %v1579_v38, 0.0  ;;  %v1583_v8 = vmul.f32 0.2, %v1579_v38  ;;  %v1848_v24 = vpop.f32.mrf.mxu0 }
 0xa8d   :  { %1586 = vst [vmem:[%s2679_s4] sm:$0xff] %v1584_v35 }
 0xa8e   :  { %v1585_v6 = vsel %vm1581_vm2, %v1579_v38, %v1583_v8 }
 0xa8f   :  { %1587 = vst [vmem:[%s2679_s4 + $0x8] sm:$0xff] %v1585_v6 }
 0xb4b   :  { %v1798_v52 = vpop.f32.mrf.mxu1 }
 0xb4c   :  { %v1799_v4 = vadd.f32 %v1798_v52, %v1500_v15 }
 0xb4d   :  { %v1800_v19 = vpop.f32.mrf.mxu1 }
 0xb4e   :  { %v1803_v27 = vadd.f32 %v1799_v4, %v2549_v0  ;;  %v1801_v18 = vadd.f32 %v1800_v19, %v1500_v15 }
 0xb50   :  { %v1805_v51 = vadd.f32 %v1803_v27, %v590_v23  ;;  %v1804_v49 = vadd.f32 %v1801_v18, %v2553_v56 }
 0xb52   :  { %vm1807_vm3 = vcmp.ge.f32.partialorder %v1805_v51, 0.0  ;;  %v1809_v12 = vmul.f32 0.2, %v1805_v51  ;;  %v1806_v36 = vadd.f32 %v1804_v49, %v591_v7 }
 0xb54   :  { %v1811_v44 = vsel %vm1807_vm3, %v1805_v51, %v1809_v12  ;;  %vm1808_vm5 = vcmp.ge.f32.partialorder %v1806_v36, 0.0  ;;  %v1810_v62 = vmul.f32 0.2, %v1806_v36 }
 0xb55   :  { %1813 = vst [vmem:[%s2679_s4 + $0x10] sm:$0xff] %v1811_v44 }
 0xb56   :  { %v1812_v57 = vsel %vm1808_vm5, %v1806_v36, %v1810_v62 }
 0xb57   :  { %1814 = vst [vmem:[%s2679_s4 + $0x18] sm:$0xff] %v1812_v57 }

</bundles_post_ra>
